<compile_context>
chip_gen: v5e
topology: v5e:2x2
jax: 0.10.0
libtpu: 0.0.40
codegen_flags: <defaults>
</compile_context>

<pallas_src>
import jax
import jax.numpy as jnp
from jax.experimental import pallas as pl
from jax.experimental.pallas import tpu as pltpu

# --- model dimensions (total_bits is runtime-configurable in the original
#     script via argparse; pick a small deterministic value here) ---
TOTAL_BITS = 16
IN_DIM = 2 * TOTAL_BITS   # 32
H1 = 512
H2 = 256
OUT_DIM = 1
NEG_SLOPE = 0.2

TM = 512  # max batch tile (rows per grid step)


def _leaky_relu(x, neg_slope=NEG_SLOPE):
    return jnp.where(x >= 0, x, neg_slope * x)


def discriminator_kernel(x_ref, w1_ref, b1_ref, w2_ref, b2_ref, w3t_ref,
                         b3_ref, out_ref):
    """One TM-row batch tile of the fused 3-layer MLP.

    w1/w2 are bf16 and VMEM-resident across the grid; biases are f32;
    b3 is a (1,) f32 scalar in SMEM."""
    # Layer 1: (TM, IN) @ (IN, H1) on the MXU, bf16 inputs, f32 accumulate.
    x = x_ref[...].astype(jnp.bfloat16)
    h = jnp.dot(x, w1_ref[...], preferred_element_type=jnp.float32)
    h = _leaky_relu(h + b1_ref[...])

    # Layer 2: (TM, H1) @ (H1, H2), bf16 inputs, f32 accumulate.
    h = jnp.dot(h.astype(jnp.bfloat16), w2_ref[...],
                preferred_element_type=jnp.float32)
    h = _leaky_relu(h + b2_ref[...])

    # Layer 3: (TM, H2) * (1, H2) -> cross-lane reduction (avoids N=1 matmul).
    v = jnp.sum(h * w3t_ref[...], axis=-1, keepdims=True) + b3_ref[0]
    out_ref[...] = v.astype(out_ref.dtype)


def discriminator_forward(x, params, tm=TM):
    """x: (B, 2*total_bits) float32. Returns validity (B, 1) float32."""
    w1, b1, w2, b2, w3t, b3 = params
    B = x.shape[0]

    # Clamp the tile for small batches (keep it a multiple of 128 so the MXU
    # and the (8,128) layout stay happy), then pad the batch to a multiple of
    # the tile; padded rows are sliced off below.
    tm = min(tm, max(128, pl.cdiv(B, 128) * 128))
    n_tiles = pl.cdiv(B, tm)
    b_pad = n_tiles * tm
    if b_pad != B:
        x = jnp.pad(x, ((0, b_pad - B), (0, 0)))

    resident = lambda shape: pl.BlockSpec(shape, lambda i: (0,) * len(shape))

    out = pl.pallas_call(
        discriminator_kernel,
        out_shape=jax.ShapeDtypeStruct((b_pad, OUT_DIM), jnp.float32),
        grid=(n_tiles,),
        in_specs=[
            pl.BlockSpec((tm, IN_DIM), lambda i: (i, 0)),          # x (tiled)
            resident(w1.shape), resident(b1.shape),                # layer 1
            resident(w2.shape), resident(b2.shape),                # layer 2
            resident(w3t.shape),                                   # layer 3 row
            pl.BlockSpec(memory_space=pltpu.MemorySpace.SMEM),     # b3 scalar
        ],
        out_specs=pl.BlockSpec((tm, OUT_DIM), lambda i: (i, 0)),
        compiler_params=pltpu.CompilerParams(
            dimension_semantics=("parallel",)),
    )(x, w1, b1, w2, b2, w3t, b3)

    return out[:B]


def init_params(key):
    """PyTorch nn.Linear default init (U[-1/sqrt(fan_in), 1/sqrt(fan_in)]),
    returned in kernel-ready layout:
      w1, w2: (in, out) bf16;  b1, b2: (1, out) f32;
      w3t: (1, H2) f32 (transposed final row);  b3: (1,) f32 scalar."""
    def linear(key, fan_in, fan_out):
        kw, kb = jax.random.split(key)
        bound = 1.0 / float(fan_in) ** 0.5
        w = jax.random.uniform(kw, (fan_in, fan_out), jnp.float32, -bound, bound)
        b = jax.random.uniform(kb, (1, fan_out), jnp.float32, -bound, bound)
        return w, b

    k1, k2, k3 = jax.random.split(key, 3)
    w1, b1 = linear(k1, IN_DIM, H1)
    w2, b2 = linear(k2, H1, H2)
    w3, b3 = linear(k3, H2, OUT_DIM)
    return (w1.astype(jnp.bfloat16), b1,
            w2.astype(jnp.bfloat16), b2,
            w3.reshape(1, H2), b3.reshape(OUT_DIM))


def reference_forward(x, params):
    """Pure-JAX reference with the same numerics (bf16 matmuls, f32 accum)."""
    w1, b1, w2, b2, w3t, b3 = params
    h = jnp.dot(x.astype(jnp.bfloat16), w1, preferred_element_type=jnp.float32)
    h = _leaky_relu(h + b1)
    h = jnp.dot(h.astype(jnp.bfloat16), w2, preferred_element_type=jnp.float32)
    h = _leaky_relu(h + b2)
    return jnp.sum(h * w3t, axis=-1, keepdims=True) + b3[0]


if __name__ == "__main__":
    key = jax.random.PRNGKey(0)
    kp, kx = jax.random.split(key)

    params = init_params(kp)
    B = 8
    x = jax.random.normal(kx, (B, IN_DIM), jnp.float32)

    out = jax.block_until_ready(discriminator_forward(x, params))
    ref = reference_forward(x, params)

    assert out.shape == (B, OUT_DIM), out.shape
    assert jnp.allclose(out, ref, atol=1e-3, rtol=1e-3), (
        f"max abs diff {jnp.max(jnp.abs(out - ref))}")

    print("KERNEL_OK")
</pallas_src>

<mosaic_0001>
module attributes {stable_mosaic.version = 11 : i64} {
  func.func @discriminator_kernel(%arg0: i32, %arg1: memref<128x32xf32, #tpu.memory_space<vmem>>, %arg2: memref<32x512xbf16, #tpu.memory_space<vmem>>, %arg3: memref<1x512xf32, #tpu.memory_space<vmem>>, %arg4: memref<512x256xbf16, #tpu.memory_space<vmem>>, %arg5: memref<1x256xf32, #tpu.memory_space<vmem>>, %arg6: memref<1x256xf32, #tpu.memory_space<vmem>>, %arg7: memref<1xf32, #tpu.memory_space<smem>>, %arg8: memref<128x1xf32, #tpu.memory_space<vmem>>) attributes {dimension_semantics = [#tpu.dimension_semantics<parallel>], iteration_bounds = array<i64: 1>, scalar_prefetch = 0 : i64, scratch_operands = 0 : i64, tpu.core_type = #tpu.core_type<tc>, window_params = [{transform_indices = @transform_0, window_bounds = array<i64: 128, 32>}, {pipeline_mode = #tpu.pipeline_mode<synchronous>, transform_indices = @transform_1, window_bounds = array<i64: 32, 512>}, {pipeline_mode = #tpu.pipeline_mode<synchronous>, transform_indices = @transform_2, window_bounds = array<i64: 1, 512>}, {pipeline_mode = #tpu.pipeline_mode<synchronous>, transform_indices = @transform_3, window_bounds = array<i64: 512, 256>}, {pipeline_mode = #tpu.pipeline_mode<synchronous>, transform_indices = @transform_4, window_bounds = array<i64: 1, 256>}, {pipeline_mode = #tpu.pipeline_mode<synchronous>, transform_indices = @transform_5, window_bounds = array<i64: 1, 256>}, {transform_indices = @transform_6, window_bounds = array<i64: 1>}, {transform_indices = @transform_7, window_bounds = array<i64: 128, 1>}]} {
    %c0 = arith.constant 0 : index
    %c0_0 = arith.constant 0 : index
    %0 = vector.load %arg1[%c0, %c0_0] : memref<128x32xf32, #tpu.memory_space<vmem>>, vector<128x32xf32>
    %1 = arith.truncf %0 : vector<128x32xf32> to vector<128x32xbf16>
    %c0_1 = arith.constant 0 : index
    %c0_2 = arith.constant 0 : index
    %2 = vector.load %arg2[%c0_1, %c0_2] : memref<32x512xbf16, #tpu.memory_space<vmem>>, vector<32x512xbf16>
    %cst = arith.constant dense<0.000000e+00> : vector<128x512xf32>
    %3 = tpu.matmul %1, %2, %cst {dimension_numbers = #tpu.dot_dimension_numbers<[1], [0], [0], [1], [0, 0, 1, 1], [], []>} : vector<128x32xbf16>, vector<32x512xbf16>, vector<128x512xf32> -> vector<128x512xf32>
    %c0_3 = arith.constant 0 : index
    %c0_4 = arith.constant 0 : index
    %4 = vector.load %arg3[%c0_3, %c0_4] : memref<1x512xf32, #tpu.memory_space<vmem>>, vector<1x512xf32>
    %5 = vector.broadcast %4 : vector<1x512xf32> to vector<128x512xf32>
    %6 = arith.addf %3, %5 : vector<128x512xf32>
    %cst_5 = arith.constant 0.000000e+00 : f32
    %7 = vector.broadcast %cst_5 : f32 to vector<128x512xf32>
    %8 = arith.cmpf oge, %6, %7 : vector<128x512xf32>
    %cst_6 = arith.constant 2.000000e-01 : f32
    %9 = vector.broadcast %cst_6 : f32 to vector<128x512xf32>
    %10 = arith.mulf %9, %6 : vector<128x512xf32>
    %11 = arith.select %8, %6, %10 : vector<128x512xi1>, vector<128x512xf32>
    %12 = arith.truncf %11 : vector<128x512xf32> to vector<128x512xbf16>
    %c0_7 = arith.constant 0 : index
    %c0_8 = arith.constant 0 : index
    %13 = vector.load %arg4[%c0_7, %c0_8] : memref<512x256xbf16, #tpu.memory_space<vmem>>, vector<512x256xbf16>
    %cst_9 = arith.constant dense<0.000000e+00> : vector<128x256xf32>
    %14 = tpu.matmul %12, %13, %cst_9 {dimension_numbers = #tpu.dot_dimension_numbers<[1], [0], [0], [1], [0, 0, 1, 1], [], []>} : vector<128x512xbf16>, vector<512x256xbf16>, vector<128x256xf32> -> vector<128x256xf32>
    %c0_10 = arith.constant 0 : index
    %c0_11 = arith.constant 0 : index
    %15 = vector.load %arg5[%c0_10, %c0_11] : memref<1x256xf32, #tpu.memory_space<vmem>>, vector<1x256xf32>
    %16 = vector.broadcast %15 : vector<1x256xf32> to vector<128x256xf32>
    %17 = arith.addf %14, %16 : vector<128x256xf32>
    %cst_12 = arith.constant 0.000000e+00 : f32
    %18 = vector.broadcast %cst_12 : f32 to vector<128x256xf32>
    %19 = arith.cmpf oge, %17, %18 : vector<128x256xf32>
    %cst_13 = arith.constant 2.000000e-01 : f32
    %20 = vector.broadcast %cst_13 : f32 to vector<128x256xf32>
    %21 = arith.mulf %20, %17 : vector<128x256xf32>
    %22 = arith.select %19, %17, %21 : vector<128x256xi1>, vector<128x256xf32>
    %c0_14 = arith.constant 0 : index
    %c0_15 = arith.constant 0 : index
    %23 = vector.load %arg6[%c0_14, %c0_15] : memref<1x256xf32, #tpu.memory_space<vmem>>, vector<1x256xf32>
    %24 = vector.broadcast %23 : vector<1x256xf32> to vector<128x256xf32>
    %25 = arith.mulf %22, %24 : vector<128x256xf32>
    %cst_16 = arith.constant dense<0.000000e+00> : vector<128xf32>
    %26 = vector.multi_reduction <add>, %25, %cst_16 [1] : vector<128x256xf32> to vector<128xf32>
    %27 = vector.shape_cast %26 : vector<128xf32> to vector<128x1xf32>
    %c0_17 = arith.constant 0 : index
    %28 = memref.load %arg7[%c0_17] : memref<1xf32, #tpu.memory_space<smem>>
    %29 = vector.broadcast %28 : f32 to vector<128x1xf32>
    %30 = arith.addf %27, %29 : vector<128x1xf32>
    %c0_18 = arith.constant 0 : index
    %c0_19 = arith.constant 0 : index
    %31 = vector.load %arg8[%c0_18, %c0_19] : memref<128x1xf32, #tpu.memory_space<vmem>>, vector<128x1xf32>
    tpu.vector_store %arg8[%c0_18, %c0_19], %30 {strides = array<i32>} : memref<128x1xf32, #tpu.memory_space<vmem>>, vector<128x1xf32>,
    return
  }
  func.func @transform_0(%arg0: i32) -> (i32, i32) {
    %c0_i32 = arith.constant 0 : i32
    %c0_i32_0 = arith.constant 0 : i32
    return %arg0, %c0_i32 : i32, i32
  }
  func.func @transform_1(%arg0: i32) -> (i32, i32) {
    %c0_i32 = arith.constant 0 : i32
    %c0_i32_0 = arith.constant 0 : i32
    %c0_i32_1 = arith.constant 0 : i32
    return %c0_i32, %c0_i32_0 : i32, i32
  }
  func.func @transform_2(%arg0: i32) -> (i32, i32) {
    %c0_i32 = arith.constant 0 : i32
    %c0_i32_0 = arith.constant 0 : i32
    %c0_i32_1 = arith.constant 0 : i32
    return %c0_i32, %c0_i32_0 : i32, i32
  }
  func.func @transform_3(%arg0: i32) -> (i32, i32) {
    %c0_i32 = arith.constant 0 : i32
    %c0_i32_0 = arith.constant 0 : i32
    %c0_i32_1 = arith.constant 0 : i32
    return %c0_i32, %c0_i32_0 : i32, i32
  }
  func.func @transform_4(%arg0: i32) -> (i32, i32) {
    %c0_i32 = arith.constant 0 : i32
    %c0_i32_0 = arith.constant 0 : i32
    %c0_i32_1 = arith.constant 0 : i32
    return %c0_i32, %c0_i32_0 : i32, i32
  }
  func.func @transform_5(%arg0: i32) -> (i32, i32) {
    %c0_i32 = arith.constant 0 : i32
    %c0_i32_0 = arith.constant 0 : i32
    %c0_i32_1 = arith.constant 0 : i32
    return %c0_i32, %c0_i32_0 : i32, i32
  }
  func.func @transform_6(%arg0: i32) -> i32 {
    %c0_i32 = arith.constant 0 : i32
    %c0_i32_0 = arith.constant 0 : i32
    return %c0_i32 : i32
  }
  func.func @transform_7(%arg0: i32) -> (i32, i32) {
    %c0_i32 = arith.constant 0 : i32
    %c0_i32_0 = arith.constant 0 : i32
    return %arg0, %c0_i32 : i32, i32
  }
}

</mosaic_0001>

<bundles_post_ra>
// kernel: tpu_custom_call.1
= control target key start
LH: loop header
LB: loop body
LE: loop exit
PB: predicated region body
PF: predicated region fallthrough
CT: control target
= control target key end

     0   :  { %13 = vsyncpa [#allocation4], 0  ;;  %s1996_s27 = smov [#allocation3]   ;;  %s1997_s29 = smov 128   ;;  %s2603_s0 = inlined_call_operand.vmem [shape: f32[128,32], index: 0, kind: input, shape index: {}]   ;;  %s2604_s1 = inlined_call_operand.vmem [shape: bf16[32,512], index: 1, kind: input, shape index: {}]   ;;  %s2605_s2 = inlined_call_operand.vmem [shape: f32[1,512], index: 2, kind: input, shape index: {}]   ;;  %s2606_s3 = inlined_call_operand.hbm [shape: bf16[512,256], index: 3, kind: input, shape index: {}]   ;;  %s2607_s4 = inlined_call_operand.vmem [shape: f32[1,256], index: 4, kind: input, shape index: {}]   ;;  %s2608_s5 = inlined_call_operand.vmem [shape: f32[1,256], index: 5, kind: input, shape index: {}]   ;;  %s2609_s6 = inlined_call_operand.<no memory space> [shape: f32[1], index: 6, kind: input, shape index: {}]   ;;  %s2610_s7 = inlined_call_operand.vmem [shape: f32[128,1], index: 7, kind: output, shape index: {}]  }
   0x1   :  { %s24_s26 = sshll.u32 %s2606_s3, 4  ;;  %s26_s28 = sshll.u32 %s1996_s27, 4  ;;  %s25_s26 = int_to_ptr.hbm [resolvable:$true] %s24_s26  ;;  %s27_s28 = int_to_ptr.vmem [resolvable:$true] %s26_s28 }
   0x2   :  { %s1998_s30 = smov 8  }
   0x3   :  { %32 = dma.hbm_to_vmem [thread:$0]  %s25_s26, 8192, %s27_s28, [#allocation4], %s1997_s29, %s1997_s29, %s1998_s30  }
   0x4   :  { %1994 = dma.done.wait [#allocation4], 8192  }
   0x5   :  { %1995 = vsyncadd [#allocation4], 4294959104  ;;  %v1593_v0 = vld [vmem:[%s2604_s1 + $0x20] sm:$0xf]  ;;  %v1901_v1 = vld [vmem:[%s2604_s1 + $0x2c] sm:$0xf0] }
   0x6   :  { %v1899_v2 = vld [vmem:[%s2604_s1 + $0x24] sm:$0xf]  ;;  %v1594_v3 = vor.u32 %v1901_v1, %v1593_v0  ;;  %v1595_v4 = vld [vmem:[%s2604_s1 + $0x30] sm:$0xf0]  ;;  %v1601_v5 = vld [vmem:[%s2604_s1 + $0x28] sm:$0xf] }
   0x7   :  { %v1902_v6 = vld [vmem:[%s2604_s1 + $0x34] sm:$0xf0]  ;;  %v1598_v7 = vor.u32 %v1899_v2, %v1595_v4  ;;  %v1900_v9 = vld [vmem:[%s2604_s1 + $0x2c] sm:$0xf]  ;;  %v1603_v10 = vld [vmem:[%s2604_s1 + $0x38] sm:$0xf0] }
   0x8   :  { %v1602_v8 = vor.u32 %v1902_v6, %v1601_v5  ;;  %v1577_v11 = vld [vmem:[%s2604_s1] sm:$0xf]  ;;  %157 = vmatpush.bf16.msra.mxu0 %v1594_v3  ;;  %v1606_v12 = vor.u32 %v1900_v9, %v1603_v10  ;;  %v1897_v13 = vld [vmem:[%s2604_s1 + $0xc] sm:$0xf0]  ;;  %v1895_v14 = vld [vmem:[%s2604_s1 + $0x4] sm:$0xf] }
   0x9   :  { %v1579_v15 = vld [vmem:[%s2604_s1 + $0x10] sm:$0xf0]  ;;  %206 = vmatpush.bf16.msra.mxu1 %v1598_v7  ;;  %v1578_v16 = vor.u32 %v1897_v13, %v1577_v11  ;;  %v1585_v18 = vld [vmem:[%s2604_s1 + $0x8] sm:$0xf]  ;;  %v1898_v19 = vld [vmem:[%s2604_s1 + $0x14] sm:$0xf0] }
   0xa   :  { %255 = vmatpush.bf16.msra.mxu2 %v1602_v8  ;;  %v1582_v17 = vor.u32 %v1895_v14, %v1579_v15  ;;  %v1896_v20 = vld [vmem:[%s2604_s1 + $0xc] sm:$0xf]  ;;  %304 = vmatpush.bf16.msra.mxu3 %v1606_v12  ;;  %v1586_v21 = vor.u32 %v1898_v19, %v1585_v18  ;;  %v1587_v22 = vld [vmem:[%s2604_s1 + $0x18] sm:$0xf0]  ;;  %v44_v23 = vld [vmem:[%s2603_s0] sm:$0xff]  ;;  %vm126_vm0 = vcmask 261120  }
   0xb   :  { %v45_v24 = vld [vmem:[%s2603_s0 + $0x8] sm:$0xff]  ;;  %v1590_v25 = vor.u32 %v1896_v20, %v1587_v22  ;;  %v1825_v27 = vld [vmem:[#allocation3 + $0x170] sm:$0xf]  ;;  %v1950_v28 = vld [vmem:[#allocation3 + $0x174] sm:$0xf0] }
   0xc   :  { %v60_v26 = vpack.c.bf16 %v45_v24, %v44_v23  ;;  %158 = vmatpush.bf16.msra.mxu0 %v1578_v16  ;;  %v1697_v29 = vld [vmem:[#allocation3 + $0x70] sm:$0xf]  ;;  %v1918_v30 = vld [vmem:[#allocation3 + $0x74] sm:$0xf0]  ;;  %v1826_v31 = vor.u32 %v1950_v28, %v1825_v27  ;;  %v1817_v39 = vld [vmem:[#allocation3 + $0x160] sm:$0xf] }
   0xd   :  { %207 = vmatpush.bf16.msra.mxu1 %v1582_v17  ;;  %v1698_v32 = vor.u32 %v1918_v30, %v1697_v29  ;;  %v1889_v33 = vld [vmem:[#allocation3 + $0x1f0] sm:$0xf]  ;;  %v1966_v34 = vld [vmem:[#allocation3 + $0x1f4] sm:$0xf0]  ;;  %v1948_v40 = vld [vmem:[#allocation3 + $0x164] sm:$0xf0] }
   0xe   :  { %256 = vmatpush.bf16.msra.mxu2 %v1586_v21  ;;  %v1761_v35 = vld [vmem:[#allocation3 + $0xf0] sm:$0xf]  ;;  %305 = vmatpush.bf16.msra.mxu3 %v1590_v25  ;;  %v1890_v36 = vor.u32 %v1966_v34, %v1889_v33  ;;  %v1934_v37 = vld [vmem:[#allocation3 + $0xf4] sm:$0xf0]  ;;  %v1689_v41 = vld [vmem:[#allocation3 + $0x60] sm:$0xf]  ;;  %v1818_v42 = vor.u32 %v1948_v40, %v1817_v39 }
   0xf   :  { %1607 = vmatmul.msk.bf16.vlgmr.msra.gmra.mxu0 %vm126_vm0, %v60_v26  ;;  %v1762_v38 = vor.u32 %v1934_v37, %v1761_v35  ;;  %v1916_v43 = vld [vmem:[#allocation3 + $0x64] sm:$0xf0]  ;;  %v1881_v44 = vld [vmem:[#allocation3 + $0x1e0] sm:$0xf]  ;;  %v46_v51 = vld [vmem:[%s2603_s0 + $0x10] sm:$0xff] }
  0x10   :  { %1615 = vmatmul.msk.bf16.vlgmr.msra.gmra.mxu1 %vm126_vm0, %v60_v26  ;;  %961 = vmatpush.bf16.msrb.mxu0 %v1698_v32  ;;  %v1964_v45 = vld [vmem:[#allocation3 + $0x1e4] sm:$0xf0]  ;;  %v1690_v46 = vor.u32 %v1916_v43, %v1689_v41  ;;  %v1753_v48 = vld [vmem:[#allocation3 + $0xe0] sm:$0xf]  ;;  %v47_v52 = vld [vmem:[%s2603_s0 + $0x18] sm:$0xff] }
  0x11   :  { %1623 = vmatmul.msk.bf16.vlgmr.msra.gmra.mxu2 %vm126_vm0, %v60_v26  ;;  %1631 = vmatmul.msk.bf16.vlgmr.msra.gmra.mxu3 %vm126_vm0, %v60_v26  ;;  %v1882_v47 = vor.u32 %v1964_v45, %v1881_v44  ;;  %v1932_v49 = vld [vmem:[#allocation3 + $0xe4] sm:$0xf0]  ;;  %v61_v53 = vpack.c.bf16 %v47_v52, %v46_v51  ;;  %v1809_v54 = vld [vmem:[#allocation3 + $0x150] sm:$0xf]  ;;  %v1946_v55 = vld [vmem:[#allocation3 + $0x154] sm:$0xf0] }
  0x12   :  { %1059 = vmatpush.bf16.msrb.mxu2 %v1826_v31  ;;  %1108 = vmatpush.bf16.msrb.mxu3 %v1890_v36  ;;  %v1754_v50 = vor.u32 %v1932_v49, %v1753_v48  ;;  %v1681_v56 = vld [vmem:[#allocation3 + $0x50] sm:$0xf]  ;;  %v1810_v57 = vor.u32 %v1946_v55, %v1809_v54  ;;  %v1914_v58 = vld [vmem:[#allocation3 + $0x54] sm:$0xf0]  ;;  %v48_v2 = vld [vmem:[%s2603_s0 + $0x20] sm:$0xff] }
  0x13   :  { %1010 = vmatpush.bf16.msrb.mxu1 %v1762_v38  ;;  %v1873_v59 = vld [vmem:[#allocation3 + $0x1d0] sm:$0xf]  ;;  %v1962_v60 = vld [vmem:[#allocation3 + $0x1d4] sm:$0xf0]  ;;  %v1682_v61 = vor.u32 %v1914_v58, %v1681_v56  ;;  %v49_v3 = vld [vmem:[%s2603_s0 + $0x28] sm:$0xff] }
  0x14   :  { %962 = vmatpush.bf16.msrb.mxu0 %v1690_v46  ;;  %v1874_v62 = vor.u32 %v1962_v60, %v1873_v59  ;;  %v1745_v63 = vld [vmem:[#allocation3 + $0xd0] sm:$0xf]  ;;  %v1930_v0 = vld [vmem:[#allocation3 + $0xd4] sm:$0xf0]  ;;  %v62_v4 = vpack.c.bf16 %v49_v3, %v48_v2  ;;  %v1801_v5 = vld [vmem:[#allocation3 + $0x140] sm:$0xf] }
  0x15   :  { %v1746_v1 = vor.u32 %v1930_v0, %v1745_v63  ;;  %v1944_v6 = vld [vmem:[#allocation3 + $0x144] sm:$0xf0]  ;;  %v1673_v7 = vld [vmem:[#allocation3 + $0x40] sm:$0xf]  ;;  %v50_v17 = vld [vmem:[%s2603_s0 + $0x30] sm:$0xff] }
  0x16   :  { %1060 = vmatpush.bf16.msrb.mxu2 %v1818_v42  ;;  %1109 = vmatpush.bf16.msrb.mxu3 %v1882_v47  ;;  %v1802_v8 = vor.u32 %v1944_v6, %v1801_v5  ;;  %v1912_v9 = vld [vmem:[#allocation3 + $0x44] sm:$0xf0]  ;;  %v1865_v10 = vld [vmem:[#allocation3 + $0x1c0] sm:$0xf]  ;;  %v51_v18 = vld [vmem:[%s2603_s0 + $0x38] sm:$0xff] }
  0x17   :  { %1011 = vmatpush.bf16.msrb.mxu1 %v1754_v50  ;;  %v1960_v11 = vld [vmem:[#allocation3 + $0x1c4] sm:$0xf0]  ;;  %v1674_v12 = vor.u32 %v1912_v9, %v1673_v7  ;;  %v1737_v14 = vld [vmem:[#allocation3 + $0xc0] sm:$0xf]  ;;  %v63_v19 = vpack.c.bf16 %v51_v18, %v50_v17  ;;  %v1793_v20 = vld [vmem:[#allocation3 + $0x130] sm:$0xf] }
  0x18   :  { %963 = vmatpush.bf16.msrb.mxu0 %v1682_v61  ;;  %v1866_v13 = vor.u32 %v1960_v11, %v1865_v10  ;;  %v1928_v15 = vld [vmem:[#allocation3 + $0xc4] sm:$0xf0]  ;;  %v1942_v21 = vld [vmem:[#allocation3 + $0x134] sm:$0xf0]  ;;  %v1665_v22 = vld [vmem:[#allocation3 + $0x30] sm:$0xf] }
  0x19   :  { %v1738_v16 = vor.u32 %v1928_v15, %v1737_v14  ;;  %v1794_v23 = vor.u32 %v1942_v21, %v1793_v20  ;;  %v1910_v24 = vld [vmem:[#allocation3 + $0x34] sm:$0xf0]  ;;  %v1857_v25 = vld [vmem:[#allocation3 + $0x1b0] sm:$0xf]  ;;  %v52_v32 = vld [vmem:[%s2603_s0 + $0x40] sm:$0xff] }
  0x1a   :  { %1061 = vmatpush.bf16.msrb.mxu2 %v1810_v57  ;;  %1110 = vmatpush.bf16.msrb.mxu3 %v1874_v62  ;;  %v1958_v26 = vld [vmem:[#allocation3 + $0x1b4] sm:$0xf0]  ;;  %v1666_v27 = vor.u32 %v1910_v24, %v1665_v22  ;;  %v1729_v29 = vld [vmem:[#allocation3 + $0xb0] sm:$0xf]  ;;  %v53_v33 = vld [vmem:[%s2603_s0 + $0x48] sm:$0xff] }
  0x1b   :  { %1012 = vmatpush.bf16.msrb.mxu1 %v1746_v1  ;;  %v1858_v28 = vor.u32 %v1958_v26, %v1857_v25  ;;  %v1926_v30 = vld [vmem:[#allocation3 + $0xb4] sm:$0xf0]  ;;  %v64_v34 = vpack.c.bf16 %v53_v33, %v52_v32  ;;  %v1785_v35 = vld [vmem:[#allocation3 + $0x120] sm:$0xf]  ;;  %v1940_v36 = vld [vmem:[#allocation3 + $0x124] sm:$0xf0] }
  0x1c   :  { %964 = vmatpush.bf16.msrb.mxu0 %v1674_v12  ;;  %v1730_v31 = vor.u32 %v1926_v30, %v1729_v29  ;;  %v1657_v37 = vld [vmem:[#allocation3 + $0x20] sm:$0xf]  ;;  %v1786_v38 = vor.u32 %v1940_v36, %v1785_v35  ;;  %v1908_v39 = vld [vmem:[#allocation3 + $0x24] sm:$0xf0]  ;;  %v54_v47 = vld [vmem:[%s2603_s0 + $0x50] sm:$0xff] }
  0x1d   :  { %v1849_v40 = vld [vmem:[#allocation3 + $0x1a0] sm:$0xf]  ;;  %v1956_v41 = vld [vmem:[#allocation3 + $0x1a4] sm:$0xf0]  ;;  %v1658_v42 = vor.u32 %v1908_v39, %v1657_v37  ;;  %v55_v48 = vld [vmem:[%s2603_s0 + $0x58] sm:$0xff] }
  0x1e   :  { %1062 = vmatpush.bf16.msrb.mxu2 %v1802_v8  ;;  %1111 = vmatpush.bf16.msrb.mxu3 %v1866_v13  ;;  %v1850_v43 = vor.u32 %v1956_v41, %v1849_v40  ;;  %v1721_v44 = vld [vmem:[#allocation3 + $0xa0] sm:$0xf]  ;;  %v1924_v45 = vld [vmem:[#allocation3 + $0xa4] sm:$0xf0]  ;;  %v65_v49 = vpack.c.bf16 %v55_v48, %v54_v47  ;;  %v1777_v50 = vld [vmem:[#allocation3 + $0x110] sm:$0xf] }
  0x1f   :  { %1608 = vmatmul.msk.bf16.gmra.mxu0 %vm126_vm0, %v61_v53  ;;  %1013 = vmatpush.bf16.msrb.mxu1 %v1738_v16  ;;  %v1722_v46 = vor.u32 %v1924_v45, %v1721_v44  ;;  %v1938_v51 = vld [vmem:[#allocation3 + $0x114] sm:$0xf0]  ;;  %v1649_v52 = vld [vmem:[#allocation3 + $0x10] sm:$0xf]  ;;  %v56_v62 = vld [vmem:[%s2603_s0 + $0x60] sm:$0xff] }
  0x20   :  { %1616 = vmatmul.msk.bf16.gmra.mxu1 %vm126_vm0, %v61_v53  ;;  %965 = vmatpush.bf16.msrb.mxu0 %v1666_v27  ;;  %v1906_v54 = vld [vmem:[#allocation3 + $0x14] sm:$0xf0]  ;;  %v1841_v55 = vld [vmem:[#allocation3 + $0x190] sm:$0xf]  ;;  %v57_v63 = vld [vmem:[%s2603_s0 + $0x68] sm:$0xff] }
  0x21   :  { %1624 = vmatmul.msk.bf16.gmra.mxu2 %vm126_vm0, %v61_v53  ;;  %1632 = vmatmul.msk.bf16.gmra.mxu3 %vm126_vm0, %v61_v53  ;;  %v1778_v53 = vor.u32 %v1938_v51, %v1777_v50  ;;  %v1954_v56 = vld [vmem:[#allocation3 + $0x194] sm:$0xf0]  ;;  %v1650_v57 = vor.u32 %v1906_v54, %v1649_v52  ;;  %v1713_v59 = vld [vmem:[#allocation3 + $0x90] sm:$0xf]  ;;  %v66_v0 = vpack.c.bf16 %v57_v63, %v56_v62  ;;  %v1769_v3 = vld [vmem:[#allocation3 + $0x100] sm:$0xf] }
  0x22   :  { %1063 = vmatpush.bf16.msrb.mxu2 %v1794_v23  ;;  %1112 = vmatpush.bf16.msrb.mxu3 %v1858_v28  ;;  %v1842_v58 = vor.u32 %v1954_v56, %v1841_v55  ;;  %v1922_v60 = vld [vmem:[#allocation3 + $0x94] sm:$0xf0]  ;;  %v58_v1 = vld [vmem:[%s2603_s0 + $0x70] sm:$0xff]  ;;  %v1641_v6 = vld [vmem:[#allocation3] sm:$0xf] }
  0x23   :  { %1014 = vmatpush.bf16.msrb.mxu1 %v1730_v31  ;;  %v1714_v61 = vor.u32 %v1922_v60, %v1713_v59  ;;  %v59_v2 = vld [vmem:[%s2603_s0 + $0x78] sm:$0xff]  ;;  %v1904_v7 = vld [vmem:[#allocation3 + $0x4] sm:$0xf0]  ;;  %v1833_v8 = vld [vmem:[#allocation3 + $0x180] sm:$0xf] }
  0x24   :  { %966 = vmatpush.bf16.msrb.mxu0 %v1658_v42  ;;  %v1642_v9 = vor.u32 %v1904_v7, %v1641_v6  ;;  %v1952_v10 = vld [vmem:[#allocation3 + $0x184] sm:$0xf0]  ;;  %v1705_v11 = vld [vmem:[#allocation3 + $0x80] sm:$0xf]  ;;  %v67_v15 = vpack.c.bf16 %v59_v2, %v58_v1  ;;  %v1949_v16 = vld [vmem:[#allocation3 + $0x174] sm:$0xf] }
  0x25   :  { %v1920_v12 = vld [vmem:[#allocation3 + $0x84] sm:$0xf0]  ;;  %v1834_v13 = vor.u32 %v1952_v10, %v1833_v8  ;;  %v1827_v17 = vld [vmem:[#allocation3 + $0x178] sm:$0xf0]  ;;  %v1965_v21 = vld [vmem:[#allocation3 + $0x1f4] sm:$0xf] }
  0x26   :  { %1064 = vmatpush.bf16.msrb.mxu2 %v1786_v38  ;;  %1113 = vmatpush.bf16.msrb.mxu3 %v1850_v43  ;;  %v1706_v14 = vor.u32 %v1920_v12, %v1705_v11  ;;  %v1830_v18 = vor.u32 %v1949_v16, %v1827_v17  ;;  %v1699_v20 = vld [vmem:[#allocation3 + $0x78] sm:$0xf0]  ;;  %v1933_v24 = vld [vmem:[#allocation3 + $0xf4] sm:$0xf]  ;;  %v76_v26 = vld [vmem:[%s2605_s2] sm:$0xf] }
  0x27   :  { %1015 = vmatpush.bf16.msrb.mxu1 %v1722_v46  ;;  %v1891_v23 = vld [vmem:[#allocation3 + $0x1f8] sm:$0xf0]  ;;  %v2173_v30 = vperm.slane %v76_v26, 1  ;;  %v2175_v31 = vperm.slane %v76_v26, 0  ;;  %v2179_v37 = vperm.slane %v76_v26, 2  ;;  %v2181_v41 = vperm.slane %v76_v26, 3 }
  0x28   :  { %967 = vmatpush.bf16.msrb.mxu0 %v1650_v57  ;;  %v1763_v25 = vld [vmem:[#allocation3 + $0xf8] sm:$0xf0]  ;;  %v1894_v27 = vor.u32 %v1965_v21, %v1891_v23  ;;  %v1915_v54 = vld [vmem:[#allocation3 + $0x64] sm:$0xf]  ;;  %v1691_v55 = vld [vmem:[#allocation3 + $0x68] sm:$0xf0] }
  0x29   :  { %v1766_v28 = vor.u32 %v1933_v24, %v1763_v25  ;;  %v1694_v59 = vor.u32 %v1915_v54, %v1691_v55  ;;  %v1963_v60 = vld [vmem:[#allocation3 + $0x1e4] sm:$0xf]  ;;  %v1755_v2 = vld [vmem:[#allocation3 + $0xe8] sm:$0xf0]  ;;  %v1747_v54 = vld [vmem:[#allocation3 + $0xd8] sm:$0xf0] }
  0x2a   :  { %1065 = vmatpush.bf16.msrb.mxu2 %v1778_v53  ;;  %1114 = vmatpush.bf16.msrb.mxu3 %v1842_v58  ;;  %v1819_v53 = vld [vmem:[#allocation3 + $0x168] sm:$0xf0]  ;;  %v1931_v62 = vld [vmem:[#allocation3 + $0xe4] sm:$0xf] }
  0x2b   :  { %1016 = vmatpush.bf16.msrb.mxu1 %v1714_v61  ;;  %v1883_v61 = vld [vmem:[#allocation3 + $0x1e8] sm:$0xf0]  ;;  %v1758_v7 = vor.u32 %v1931_v62, %v1755_v2 }
  0x2c   :  { %968 = vmatpush.bf16.msrb.mxu0 %v1642_v9  ;;  %v1886_v1 = vor.u32 %v1963_v60, %v1883_v61 }
  0x2e   :  { %1115 = vmatpush.bf16.msrb.mxu3 %v1834_v13 }
  0x2f   :  { %1609 = vmatmul.msk.bf16.gmra.mxu0 %vm126_vm0, %v62_v4  ;;  %1017 = vmatpush.bf16.msrb.mxu1 %v1706_v14 }
  0x30   :  { %1617 = vmatmul.msk.bf16.gmra.mxu1 %vm126_vm0, %v62_v4 }
  0x31   :  { %1625 = vmatmul.msk.bf16.gmra.mxu2 %vm126_vm0, %v62_v4  ;;  %1633 = vmatmul.msk.bf16.gmra.mxu3 %vm126_vm0, %v62_v4  ;;  %v1936_v4 = vld [vmem:[#allocation3 + $0x104] sm:$0xf0] }
  0x32   :  { %v1770_v5 = vor.u32 %v1936_v4, %v1769_v3  ;;  %1304 = vmatpush.bf16.msra.mxu3 %v1894_v27 }
  0x33   :  { %1206 = vmatpush.bf16.msra.mxu1 %v1766_v28 }
  0x34   :  { %1066 = vmatpush.bf16.msrb.mxu2 %v1770_v5 }
  0x36   :  { %1305 = vmatpush.bf16.msra.mxu3 %v1886_v1 }
  0x37   :  { %1207 = vmatpush.bf16.msra.mxu1 %v1758_v7 }
  0x38   :  { %1255 = vmatpush.bf16.msra.mxu2 %v1830_v18 }
  0x3f   :  { %1610 = vmatmul.msk.bf16.gmra.mxu0 %vm126_vm0, %v63_v19 }
  0x40   :  { %1618 = vmatmul.msk.bf16.gmra.mxu1 %vm126_vm0, %v63_v19 }
  0x41   :  { %1626 = vmatmul.msk.bf16.gmra.mxu2 %vm126_vm0, %v63_v19  ;;  %1634 = vmatmul.msk.bf16.gmra.mxu3 %vm126_vm0, %v63_v19  ;;  %v1917_v19 = vld [vmem:[#allocation3 + $0x74] sm:$0xf] }
  0x42   :  { %v1702_v22 = vor.u32 %v1917_v19, %v1699_v20 }
  0x44   :  { %1157 = vmatpush.bf16.msra.mxu0 %v1702_v22 }
  0x48   :  { %1158 = vmatpush.bf16.msra.mxu0 %v1694_v59 }
  0x4f   :  { %1611 = vmatmul.msk.bf16.gmra.mxu0 %vm126_vm0, %v64_v34 }
  0x50   :  { %1619 = vmatmul.msk.bf16.gmra.mxu1 %vm126_vm0, %v64_v34 }
  0x51   :  { %1627 = vmatmul.msk.bf16.gmra.mxu2 %vm126_vm0, %v64_v34  ;;  %1635 = vmatmul.msk.bf16.gmra.mxu3 %vm126_vm0, %v64_v34 }
  0x5f   :  { %1612 = vmatmul.msk.bf16.gmra.mxu0 %vm126_vm0, %v65_v49 }
  0x60   :  { %1620 = vmatmul.msk.bf16.gmra.mxu1 %vm126_vm0, %v65_v49 }
  0x61   :  { %1628 = vmatmul.msk.bf16.gmra.mxu2 %vm126_vm0, %v65_v49  ;;  %1636 = vmatmul.msk.bf16.gmra.mxu3 %vm126_vm0, %v65_v49  ;;  %v1947_v49 = vld [vmem:[#allocation3 + $0x164] sm:$0xf] }
  0x62   :  { %v1822_v58 = vor.u32 %v1947_v49, %v1819_v53  ;;  %v1875_v49 = vld [vmem:[#allocation3 + $0x1d8] sm:$0xf0] }
  0x64   :  { %1256 = vmatpush.bf16.msra.mxu2 %v1822_v58 }
  0x6f   :  { %1613 = vmatmul.msk.bf16.gmra.mxu0 %vm126_vm0, %v66_v0 }
  0x70   :  { %1621 = vmatmul.msk.bf16.gmra.mxu1 %vm126_vm0, %v66_v0 }
  0x71   :  { %1629 = vmatmul.msk.bf16.gmra.mxu2 %vm126_vm0, %v66_v0  ;;  %1637 = vmatmul.msk.bf16.gmra.mxu3 %vm126_vm0, %v66_v0 }
  0x7f   :  { %1614 = vmatmul.msk.bf16.gmra.mxu0 %vm126_vm0, %v67_v15 }
  0x80   :  { %1622 = vmatmul.msk.bf16.gmra.mxu1 %vm126_vm0, %v67_v15 }
  0x81   :  { %1630 = vmatmul.msk.bf16.gmra.mxu2 %vm126_vm0, %v67_v15  ;;  %1638 = vmatmul.msk.bf16.gmra.mxu3 %vm126_vm0, %v67_v15 }
  0x8c   :  { %v160_v29 = vpop.f32.mrf.mxu0 }
  0x8d   :  { %v209_v32 = vpop.f32.mrf.mxu1  ;;  %v161_v34 = vadd.f32 %v160_v29, %v2175_v31 }
  0x8e   :  { %v210_v33 = vadd.f32 %v209_v32, %v2173_v30 }
  0x8f   :  { %v411_v40 = vmul.f32 0.2, %v161_v34  ;;  %vm347_vm2 = vcmp.ge.f32.partialorder %v161_v34, 0.0 }
  0x90   :  { %v412_v36 = vmul.f32 0.2, %v210_v33  ;;  %vm348_vm1 = vcmp.ge.f32.partialorder %v210_v33, 0.0 }
  0x91   :  { %v475_v51 = vsel %vm347_vm2, %v161_v34, %v411_v40  ;;  %v1811_v40 = vld [vmem:[#allocation3 + $0x158] sm:$0xf0] }
  0x92   :  { %v476_v48 = vsel %vm348_vm1, %v210_v33, %v412_v36 }
  0x94   :  { %v258_v35 = vpop.f32.mrf.mxu2  ;;  %v307_v38 = vpop.f32.mrf.mxu3 }
  0x95   :  { %v162_v39 = vpop.f32.mrf.mxu0  ;;  %v211_v43 = vpop.f32.mrf.mxu1  ;;  %v259_v46 = vadd.f32 %v258_v35, %v2179_v37  ;;  %v308_v50 = vadd.f32 %v307_v38, %v2181_v41  ;;  %v1945_v35 = vld [vmem:[#allocation3 + $0x154] sm:$0xf] }
  0x96   :  { %v163_v42 = vadd.f32 %v162_v39, %v2175_v31  ;;  %v212_v44 = vadd.f32 %v211_v43, %v2173_v30  ;;  %v1683_v43 = vld [vmem:[#allocation3 + $0x58] sm:$0xf0] }
  0x97   :  { %v413_v3 = vmul.f32 0.2, %v259_v46  ;;  %vm349_vm5 = vcmp.ge.f32.partialorder %v259_v46, 0.0  ;;  %v414_v8 = vmul.f32 0.2, %v308_v50  ;;  %vm350_vm6 = vcmp.ge.f32.partialorder %v308_v50, 0.0 }
  0x98   :  { %vm351_vm3 = vcmp.ge.f32.partialorder %v163_v42, 0.0  ;;  %v415_v45 = vmul.f32 0.2, %v163_v42  ;;  %vm352_vm4 = vcmp.ge.f32.partialorder %v212_v44, 0.0  ;;  %v416_v47 = vmul.f32 0.2, %v212_v44 }
  0x99   :  { %v477_v14 = vsel %vm349_vm5, %v259_v46, %v413_v3  ;;  %v478_v18 = vsel %vm350_vm6, %v308_v50, %v414_v8  ;;  %v1814_v46 = vor.u32 %v1945_v35, %v1811_v40  ;;  %v1929_v50 = vld [vmem:[#allocation3 + $0xd4] sm:$0xf]  ;;  %v1867_v40 = vld [vmem:[#allocation3 + $0x1c8] sm:$0xf0] }
  0x9a   :  { %v479_v52 = vsel %vm351_vm3, %v163_v42, %v415_v45  ;;  %v480_v57 = vsel %vm352_vm4, %v212_v44, %v416_v47  ;;  %v1913_v42 = vld [vmem:[#allocation3 + $0x54] sm:$0xf]  ;;  %v1750_v60 = vor.u32 %v1929_v50, %v1747_v54 }
  0x9b   :  { %v2187_v56 = vpack.c.bf16 %v479_v52, %v475_v51  ;;  %v2189_v0 = vpack.c.bf16 %v480_v57, %v476_v48  ;;  %v1686_v47 = vor.u32 %v1913_v42, %v1683_v43  ;;  %v1961_v48 = vld [vmem:[#allocation3 + $0x1d4] sm:$0xf]  ;;  %1257 = vmatpush.bf16.msra.mxu2 %v1814_v46  ;;  %v1927_v42 = vld [vmem:[#allocation3 + $0xc4] sm:$0xf] }
  0x9c   :  { %v260_v63 = vpop.f32.mrf.mxu2  ;;  %v309_v5 = vpop.f32.mrf.mxu3  ;;  %v1878_v53 = vor.u32 %v1961_v48, %v1875_v49  ;;  %1208 = vmatpush.bf16.msra.mxu1 %v1750_v60 }
  0x9d   :  { %v261_v4 = vadd.f32 %v260_v63, %v2179_v37  ;;  %v165_v6 = vpop.f32.mrf.mxu0  ;;  %969 = vmatmul.bf16.vlgmr.msrb.gmra.mxu0 %v2187_v56  ;;  %v310_v9 = vadd.f32 %v309_v5, %v2181_v41  ;;  %v214_v10 = vpop.f32.mrf.mxu1  ;;  %1018 = vmatmul.bf16.vlgmr.msrb.gmra.mxu1 %v2189_v0 }
  0x9e   :  { %v215_v13 = vadd.f32 %v214_v10, %v2173_v30  ;;  %v166_v16 = vadd.f32 %v165_v6, %v2175_v31  ;;  %1159 = vmatpush.bf16.msra.mxu0 %v1686_v47  ;;  %1306 = vmatpush.bf16.msra.mxu3 %v1878_v53  ;;  %v1739_v47 = vld [vmem:[#allocation3 + $0xc8] sm:$0xf0] }
  0x9f   :  { %vm353_vm7 = vcmp.ge.f32.partialorder %v261_v4, 0.0  ;;  %v417_v11 = vmul.f32 0.2, %v261_v4  ;;  %vm354_vm8 = vcmp.ge.f32.partialorder %v310_v9, 0.0  ;;  %v418_v12 = vmul.f32 0.2, %v310_v9 }
  0xa0   :  { %v420_v22 = vmul.f32 0.2, %v215_v13  ;;  %v419_v25 = vmul.f32 0.2, %v166_v16  ;;  %vm356_vm9 = vcmp.ge.f32.partialorder %v215_v13, 0.0  ;;  %vm355_vm10 = vcmp.ge.f32.partialorder %v166_v16, 0.0 }
  0xa1   :  { %v481_v15 = vsel %vm353_vm7, %v261_v4, %v417_v11  ;;  %v482_v19 = vsel %vm354_vm8, %v310_v9, %v418_v12  ;;  %v1742_v53 = vor.u32 %v1927_v42, %v1739_v47 }
  0xa2   :  { %v2197_v17 = vpack.c.bf16 %v481_v15, %v477_v14  ;;  %v2199_v20 = vpack.c.bf16 %v482_v19, %v478_v18  ;;  %v484_v34 = vsel %vm356_vm9, %v215_v13, %v420_v22  ;;  %v483_v38 = vsel %vm355_vm10, %v166_v16, %v419_v25  ;;  %v1943_v25 = vld [vmem:[#allocation3 + $0x144] sm:$0xf] }
  0xa3   :  { %1209 = vmatpush.bf16.msra.mxu1 %v1742_v53 }
  0xa4   :  { %v263_v21 = vpop.f32.mrf.mxu2  ;;  %1067 = vmatmul.bf16.vlgmr.msrb.gmra.mxu2 %v2197_v17  ;;  %v312_v23 = vpop.f32.mrf.mxu3  ;;  %1116 = vmatmul.bf16.vlgmr.msrb.gmra.mxu3 %v2199_v20 }
  0xa5   :  { %v167_v24 = vpop.f32.mrf.mxu0  ;;  %v216_v27 = vpop.f32.mrf.mxu1  ;;  %v264_v32 = vadd.f32 %v263_v21, %v2179_v37  ;;  %v313_v36 = vadd.f32 %v312_v23, %v2181_v41 }
  0xa6   :  { %v168_v26 = vadd.f32 %v167_v24, %v2175_v31  ;;  %v217_v28 = vadd.f32 %v216_v27, %v2173_v30 }
  0xa7   :  { %v421_v55 = vmul.f32 0.2, %v264_v32  ;;  %v422_v61 = vmul.f32 0.2, %v313_v36  ;;  %vm357_vm13 = vcmp.ge.f32.partialorder %v264_v32, 0.0  ;;  %vm358_vm15 = vcmp.ge.f32.partialorder %v313_v36, 0.0 }
  0xa8   :  { %v423_v29 = vmul.f32 0.2, %v168_v26  ;;  %vm359_vm11 = vcmp.ge.f32.partialorder %v168_v26, 0.0  ;;  %v424_v33 = vmul.f32 0.2, %v217_v28  ;;  %vm360_vm12 = vcmp.ge.f32.partialorder %v217_v28, 0.0 }
  0xa9   :  { %v485_v4 = vsel %vm357_vm13, %v264_v32, %v421_v55  ;;  %v486_v8 = vsel %vm358_vm15, %v313_v36, %v422_v61  ;;  %v1911_v32 = vld [vmem:[#allocation3 + $0x44] sm:$0xf] }
  0xaa   :  { %v487_v39 = vsel %vm359_vm11, %v168_v26, %v423_v29  ;;  %v488_v45 = vsel %vm360_vm12, %v217_v28, %v424_v33  ;;  %v1803_v29 = vld [vmem:[#allocation3 + $0x148] sm:$0xf0] }
  0xab   :  { %v2207_v44 = vpack.c.bf16 %v487_v39, %v483_v38  ;;  %v2209_v52 = vpack.c.bf16 %v488_v45, %v484_v34  ;;  %v1675_v33 = vld [vmem:[#allocation3 + $0x48] sm:$0xf0]  ;;  %v1806_v36 = vor.u32 %v1943_v25, %v1803_v29  ;;  %v1959_v39 = vld [vmem:[#allocation3 + $0x1c4] sm:$0xf]  ;;  %v1795_v25 = vld [vmem:[#allocation3 + $0x138] sm:$0xf0] }
  0xac   :  { %v265_v51 = vpop.f32.mrf.mxu2  ;;  %v314_v58 = vpop.f32.mrf.mxu3  ;;  %v1678_v38 = vor.u32 %v1911_v32, %v1675_v33  ;;  %v1870_v46 = vor.u32 %v1959_v39, %v1867_v40 }
  0xad   :  { %v266_v57 = vadd.f32 %v265_v51, %v2179_v37  ;;  %v170_v59 = vpop.f32.mrf.mxu0  ;;  %974 = vmatmul.bf16.gmra.mxu0 %v2207_v44  ;;  %v315_v62 = vadd.f32 %v314_v58, %v2181_v41  ;;  %v219_v63 = vpop.f32.mrf.mxu1  ;;  %1023 = vmatmul.bf16.gmra.mxu1 %v2209_v52 }
  0xae   :  { %v220_v3 = vadd.f32 %v219_v63, %v2173_v30  ;;  %v171_v6 = vadd.f32 %v170_v59, %v2175_v31  ;;  %1258 = vmatpush.bf16.msra.mxu2 %v1806_v36  ;;  %1160 = vmatpush.bf16.msra.mxu0 %v1678_v38  ;;  %v1859_v36 = vld [vmem:[#allocation3 + $0x1b8] sm:$0xf0]  ;;  %v1925_v38 = vld [vmem:[#allocation3 + $0xb4] sm:$0xf] }
  0xaf   :  { %v425_v1 = vmul.f32 0.2, %v266_v57  ;;  %vm361_vm14 = vcmp.ge.f32.partialorder %v266_v57, 0.0  ;;  %v426_v2 = vmul.f32 0.2, %v315_v62  ;;  %vm362_vm0 = vcmp.ge.f32.partialorder %v315_v62, 0.0  ;;  %1307 = vmatpush.bf16.msra.mxu3 %v1870_v46 }
  0xb0   :  { %v428_v12 = vmul.f32 0.2, %v220_v3  ;;  %v427_v15 = vmul.f32 0.2, %v171_v6  ;;  %vm364_vm1 = vcmp.ge.f32.partialorder %v220_v3, 0.0  ;;  %vm363_vm2 = vcmp.ge.f32.partialorder %v171_v6, 0.0 }
  0xb1   :  { %v489_v5 = vsel %vm361_vm14, %v266_v57, %v425_v1  ;;  %v490_v9 = vsel %vm362_vm0, %v315_v62, %v426_v2 }
  0xb2   :  { %v2217_v7 = vpack.c.bf16 %v489_v5, %v485_v4  ;;  %v2219_v10 = vpack.c.bf16 %v490_v9, %v486_v8  ;;  %v492_v24 = vsel %vm364_vm1, %v220_v3, %v428_v12  ;;  %v491_v27 = vsel %vm363_vm2, %v171_v6, %v427_v15 }
  0xb4   :  { %v268_v11 = vpop.f32.mrf.mxu2  ;;  %1072 = vmatmul.bf16.gmra.mxu2 %v2217_v7  ;;  %v317_v13 = vpop.f32.mrf.mxu3  ;;  %1121 = vmatmul.bf16.gmra.mxu3 %v2219_v10 }
  0xb5   :  { %v172_v14 = vpop.f32.mrf.mxu0  ;;  %v221_v18 = vpop.f32.mrf.mxu1  ;;  %v269_v22 = vadd.f32 %v268_v11, %v2179_v37  ;;  %v318_v26 = vadd.f32 %v317_v13, %v2181_v41 }
  0xb6   :  { %v173_v16 = vadd.f32 %v172_v14, %v2175_v31  ;;  %v222_v19 = vadd.f32 %v221_v18, %v2173_v30 }
  0xb7   :  { %v429_v48 = vmul.f32 0.2, %v269_v22  ;;  %v430_v54 = vmul.f32 0.2, %v318_v26  ;;  %vm365_vm5 = vcmp.ge.f32.partialorder %v269_v22, 0.0  ;;  %vm366_vm7 = vcmp.ge.f32.partialorder %v318_v26, 0.0 }
  0xb8   :  { %v431_v21 = vmul.f32 0.2, %v173_v16  ;;  %vm367_vm3 = vcmp.ge.f32.partialorder %v173_v16, 0.0  ;;  %v432_v23 = vmul.f32 0.2, %v222_v19  ;;  %vm368_vm4 = vcmp.ge.f32.partialorder %v222_v19, 0.0 }
  0xb9   :  { %v493_v61 = vsel %vm365_vm5, %v269_v22, %v429_v48  ;;  %v494_v2 = vsel %vm366_vm7, %v318_v26, %v430_v54  ;;  %v1909_v26 = vld [vmem:[#allocation3 + $0x34] sm:$0xf] }
  0xba   :  { %v495_v28 = vsel %vm367_vm3, %v173_v16, %v431_v21  ;;  %v496_v35 = vsel %vm368_vm4, %v222_v19, %v432_v23  ;;  %v1941_v21 = vld [vmem:[#allocation3 + $0x134] sm:$0xf] }
  0xbb   :  { %v2227_v34 = vpack.c.bf16 %v495_v28, %v491_v27  ;;  %v2229_v45 = vpack.c.bf16 %v496_v35, %v492_v24  ;;  %v1667_v27 = vld [vmem:[#allocation3 + $0x38] sm:$0xf0]  ;;  %v1798_v32 = vor.u32 %v1941_v21, %v1795_v25  ;;  %v1957_v35 = vld [vmem:[#allocation3 + $0x1b4] sm:$0xf]  ;;  %v1939_v21 = vld [vmem:[#allocation3 + $0x124] sm:$0xf] }
  0xbc   :  { %v270_v43 = vpop.f32.mrf.mxu2  ;;  %v319_v50 = vpop.f32.mrf.mxu3  ;;  %v1670_v33 = vor.u32 %v1909_v26, %v1667_v27  ;;  %v1862_v42 = vor.u32 %v1957_v35, %v1859_v36  ;;  %v1787_v25 = vld [vmem:[#allocation3 + $0x128] sm:$0xf0]  ;;  %v1907_v26 = vld [vmem:[#allocation3 + $0x24] sm:$0xf] }
  0xbd   :  { %v271_v49 = vadd.f32 %v270_v43, %v2179_v37  ;;  %v175_v51 = vpop.f32.mrf.mxu0  ;;  %979 = vmatmul.bf16.gmra.mxu0 %v2227_v34  ;;  %v320_v55 = vadd.f32 %v319_v50, %v2181_v41  ;;  %v224_v57 = vpop.f32.mrf.mxu1  ;;  %1028 = vmatmul.bf16.gmra.mxu1 %v2229_v45  ;;  %v1731_v43 = vld [vmem:[#allocation3 + $0xb8] sm:$0xf0]  ;;  %v1659_v27 = vld [vmem:[#allocation3 + $0x28] sm:$0xf0]  ;;  %v1955_v36 = vld [vmem:[#allocation3 + $0x1a4] sm:$0xf] }
  0xbe   :  { %v225_v60 = vadd.f32 %v224_v57, %v2173_v30  ;;  %v176_v63 = vadd.f32 %v175_v51, %v2175_v31  ;;  %1259 = vmatpush.bf16.msra.mxu2 %v1798_v32  ;;  %v1734_v50 = vor.u32 %v1925_v38, %v1731_v43  ;;  %1161 = vmatpush.bf16.msra.mxu0 %v1670_v33  ;;  %v1851_v38 = vld [vmem:[#allocation3 + $0x1a8] sm:$0xf0] }
  0xbf   :  { %v433_v58 = vmul.f32 0.2, %v271_v49  ;;  %vm369_vm6 = vcmp.ge.f32.partialorder %v271_v49, 0.0  ;;  %v434_v59 = vmul.f32 0.2, %v320_v55  ;;  %vm370_vm8 = vcmp.ge.f32.partialorder %v320_v55, 0.0  ;;  %1308 = vmatpush.bf16.msra.mxu3 %v1862_v42 }
  0xc0   :  { %v436_v6 = vmul.f32 0.2, %v225_v60  ;;  %v435_v11 = vmul.f32 0.2, %v176_v63  ;;  %vm372_vm9 = vcmp.ge.f32.partialorder %v225_v60, 0.0  ;;  %vm371_vm10 = vcmp.ge.f32.partialorder %v176_v63, 0.0  ;;  %1210 = vmatpush.bf16.msra.mxu1 %v1734_v50 }
  0xc1   :  { %v497_v62 = vsel %vm369_vm6, %v271_v49, %v433_v58  ;;  %v498_v3 = vsel %vm370_vm8, %v320_v55, %v434_v59  ;;  %v1790_v33 = vor.u32 %v1939_v21, %v1787_v25  ;;  %v1662_v35 = vor.u32 %v1907_v26, %v1659_v27  ;;  %v1937_v25 = vld [vmem:[#allocation3 + $0x114] sm:$0xf] }
  0xc2   :  { %v2237_v1 = vpack.c.bf16 %v497_v62, %v493_v61  ;;  %v2239_v4 = vpack.c.bf16 %v498_v3, %v494_v2  ;;  %v500_v19 = vsel %vm372_vm9, %v225_v60, %v436_v6  ;;  %v499_v23 = vsel %vm371_vm10, %v176_v63, %v435_v11 }
  0xc3   :  { %1260 = vmatpush.bf16.msra.mxu2 %v1790_v33  ;;  %1162 = vmatpush.bf16.msra.mxu0 %v1662_v35  ;;  %v1779_v33 = vld [vmem:[#allocation3 + $0x118] sm:$0xf0]  ;;  %v1905_v35 = vld [vmem:[#allocation3 + $0x14] sm:$0xf] }
  0xc4   :  { %v273_v5 = vpop.f32.mrf.mxu2  ;;  %1077 = vmatmul.bf16.gmra.mxu2 %v2237_v1  ;;  %v322_v8 = vpop.f32.mrf.mxu3  ;;  %1126 = vmatmul.bf16.gmra.mxu3 %v2239_v4 }
  0xc5   :  { %v177_v9 = vpop.f32.mrf.mxu0  ;;  %v226_v13 = vpop.f32.mrf.mxu1  ;;  %v274_v16 = vadd.f32 %v273_v5, %v2179_v37  ;;  %v323_v22 = vadd.f32 %v322_v8, %v2181_v41 }
  0xc6   :  { %v178_v12 = vadd.f32 %v177_v9, %v2175_v31  ;;  %v227_v14 = vadd.f32 %v226_v13, %v2173_v30 }
  0xc7   :  { %v437_v46 = vmul.f32 0.2, %v274_v16  ;;  %v438_v51 = vmul.f32 0.2, %v323_v22  ;;  %vm373_vm13 = vcmp.ge.f32.partialorder %v274_v16, 0.0  ;;  %vm374_vm15 = vcmp.ge.f32.partialorder %v323_v22, 0.0 }
  0xc8   :  { %v439_v15 = vmul.f32 0.2, %v178_v12  ;;  %vm375_vm11 = vcmp.ge.f32.partialorder %v178_v12, 0.0  ;;  %v440_v18 = vmul.f32 0.2, %v227_v14  ;;  %vm376_vm12 = vcmp.ge.f32.partialorder %v227_v14, 0.0 }
  0xc9   :  { %v501_v59 = vsel %vm373_vm13, %v274_v16, %v437_v46  ;;  %v502_v63 = vsel %vm374_vm15, %v323_v22, %v438_v51  ;;  %v1854_v46 = vor.u32 %v1955_v36, %v1851_v38  ;;  %v1651_v36 = vld [vmem:[#allocation3 + $0x18] sm:$0xf0] }
  0xca   :  { %v503_v24 = vsel %vm375_vm11, %v178_v12, %v439_v15  ;;  %v504_v29 = vsel %vm376_vm12, %v227_v14, %v440_v18 }
  0xcb   :  { %v2247_v28 = vpack.c.bf16 %v503_v24, %v499_v23  ;;  %v2249_v40 = vpack.c.bf16 %v504_v29, %v500_v19  ;;  %1309 = vmatpush.bf16.msra.mxu3 %v1854_v46  ;;  %v1654_v46 = vor.u32 %v1905_v35, %v1651_v36 }
  0xcc   :  { %v275_v39 = vpop.f32.mrf.mxu2  ;;  %v324_v48 = vpop.f32.mrf.mxu3 }
  0xcd   :  { %v276_v47 = vadd.f32 %v275_v39, %v2179_v37  ;;  %v180_v49 = vpop.f32.mrf.mxu0  ;;  %984 = vmatmul.bf16.gmra.mxu0 %v2247_v28  ;;  %v325_v53 = vadd.f32 %v324_v48, %v2181_v41  ;;  %v229_v54 = vpop.f32.mrf.mxu1  ;;  %1033 = vmatmul.bf16.gmra.mxu1 %v2249_v40  ;;  %v1923_v39 = vld [vmem:[#allocation3 + $0xa4] sm:$0xf] }
  0xce   :  { %v230_v58 = vadd.f32 %v229_v54, %v2173_v30  ;;  %v181_v61 = vadd.f32 %v180_v49, %v2175_v31  ;;  %1163 = vmatpush.bf16.msra.mxu0 %v1654_v46  ;;  %v1835_v46 = vld [vmem:[#allocation3 + $0x188] sm:$0xf0] }
  0xcf   :  { %v441_v55 = vmul.f32 0.2, %v276_v47  ;;  %vm377_vm14 = vcmp.ge.f32.partialorder %v276_v47, 0.0  ;;  %v442_v57 = vmul.f32 0.2, %v325_v53  ;;  %vm378_vm0 = vcmp.ge.f32.partialorder %v325_v53, 0.0 }
  0xd0   :  { %v444_v6 = vmul.f32 0.2, %v230_v58  ;;  %v443_v11 = vmul.f32 0.2, %v181_v61  ;;  %vm380_vm1 = vcmp.ge.f32.partialorder %v230_v58, 0.0  ;;  %vm379_vm2 = vcmp.ge.f32.partialorder %v181_v61, 0.0 }
  0xd1   :  { %v505_v60 = vsel %vm377_vm14, %v276_v47, %v441_v55  ;;  %v506_v2 = vsel %vm378_vm0, %v325_v53, %v442_v57  ;;  %v1723_v47 = vld [vmem:[#allocation3 + $0xa8] sm:$0xf0] }
  0xd2   :  { %v2257_v62 = vpack.c.bf16 %v505_v60, %v501_v59  ;;  %v2259_v3 = vpack.c.bf16 %v506_v2, %v502_v63  ;;  %v508_v19 = vsel %vm380_vm1, %v230_v58, %v444_v6  ;;  %v507_v23 = vsel %vm379_vm2, %v181_v61, %v443_v11 }
  0xd3   :  { %v1726_v53 = vor.u32 %v1923_v39, %v1723_v47  ;;  %v1953_v47 = vld [vmem:[#allocation3 + $0x194] sm:$0xf] }
  0xd4   :  { %v278_v5 = vpop.f32.mrf.mxu2  ;;  %1082 = vmatmul.bf16.gmra.mxu2 %v2257_v62  ;;  %v327_v8 = vpop.f32.mrf.mxu3  ;;  %1131 = vmatmul.bf16.gmra.mxu3 %v2259_v3 }
  0xd5   :  { %v182_v9 = vpop.f32.mrf.mxu0  ;;  %v231_v13 = vpop.f32.mrf.mxu1  ;;  %v279_v16 = vadd.f32 %v278_v5, %v2179_v37  ;;  %v328_v22 = vadd.f32 %v327_v8, %v2181_v41  ;;  %1211 = vmatpush.bf16.msra.mxu1 %v1726_v53 }
  0xd6   :  { %v183_v12 = vadd.f32 %v182_v9, %v2175_v31  ;;  %v232_v14 = vadd.f32 %v231_v13, %v2173_v30 }
  0xd7   :  { %v445_v48 = vmul.f32 0.2, %v279_v16  ;;  %vm381_vm5 = vcmp.ge.f32.partialorder %v279_v16, 0.0  ;;  %v446_v54 = vmul.f32 0.2, %v328_v22  ;;  %vm382_vm6 = vcmp.ge.f32.partialorder %v328_v22, 0.0 }
  0xd8   :  { %vm383_vm3 = vcmp.ge.f32.partialorder %v183_v12, 0.0  ;;  %v447_v15 = vmul.f32 0.2, %v183_v12  ;;  %vm384_vm4 = vcmp.ge.f32.partialorder %v232_v14, 0.0  ;;  %v448_v18 = vmul.f32 0.2, %v232_v14 }
  0xd9   :  { %v509_v61 = vsel %vm381_vm5, %v279_v16, %v445_v48  ;;  %v510_v6 = vsel %vm382_vm6, %v328_v22, %v446_v54  ;;  %v1843_v48 = vld [vmem:[#allocation3 + $0x198] sm:$0xf0] }
  0xda   :  { %v511_v24 = vsel %vm383_vm3, %v183_v12, %v447_v15  ;;  %v512_v32 = vsel %vm384_vm4, %v232_v14, %v448_v18  ;;  %v1846_v53 = vor.u32 %v1953_v47, %v1843_v48  ;;  %v1715_v54 = vld [vmem:[#allocation3 + $0x98] sm:$0xf0] }
  0xdb   :  { %v2267_v29 = vpack.c.bf16 %v511_v24, %v507_v23  ;;  %v2269_v43 = vpack.c.bf16 %v512_v32, %v508_v19 }
  0xdc   :  { %v280_v42 = vpop.f32.mrf.mxu2  ;;  %v329_v50 = vpop.f32.mrf.mxu3  ;;  %1310 = vmatpush.bf16.msra.mxu3 %v1846_v53 }
  0xdd   :  { %v281_v49 = vadd.f32 %v280_v42, %v2179_v37  ;;  %v185_v51 = vpop.f32.mrf.mxu0  ;;  %989 = vmatmul.bf16.gmra.mxu0 %v2267_v29  ;;  %v330_v55 = vadd.f32 %v329_v50, %v2181_v41  ;;  %v234_v57 = vpop.f32.mrf.mxu1  ;;  %1038 = vmatmul.bf16.gmra.mxu1 %v2269_v43  ;;  %v1782_v42 = vor.u32 %v1937_v25, %v1779_v33  ;;  %v1771_v33 = vld [vmem:[#allocation3 + $0x108] sm:$0xf0] }
  0xde   :  { %v235_v60 = vadd.f32 %v234_v57, %v2173_v30  ;;  %v186_v2 = vadd.f32 %v185_v51, %v2175_v31 }
  0xdf   :  { %vm385_vm7 = vcmp.ge.f32.partialorder %v281_v49, 0.0  ;;  %v449_v58 = vmul.f32 0.2, %v281_v49  ;;  %vm386_vm8 = vcmp.ge.f32.partialorder %v330_v55, 0.0  ;;  %v450_v59 = vmul.f32 0.2, %v330_v55  ;;  %1261 = vmatpush.bf16.msra.mxu2 %v1782_v42 }
  0xe0   :  { %v452_v12 = vmul.f32 0.2, %v235_v60  ;;  %v451_v15 = vmul.f32 0.2, %v186_v2  ;;  %vm388_vm9 = vcmp.ge.f32.partialorder %v235_v60, 0.0  ;;  %vm387_vm10 = vcmp.ge.f32.partialorder %v186_v2, 0.0 }
  0xe1   :  { %v513_v63 = vsel %vm385_vm7, %v281_v49, %v449_v58  ;;  %v514_v8 = vsel %vm386_vm8, %v330_v55, %v450_v59  ;;  %v1921_v49 = vld [vmem:[#allocation3 + $0x94] sm:$0xf]  ;;  %v1951_v42 = vld [vmem:[#allocation3 + $0x184] sm:$0xf] }
  0xe2   :  { %v2277_v5 = vpack.c.bf16 %v513_v63, %v509_v61  ;;  %v2279_v9 = vpack.c.bf16 %v514_v8, %v510_v6  ;;  %v516_v24 = vsel %vm388_vm9, %v235_v60, %v452_v12  ;;  %v515_v27 = vsel %vm387_vm10, %v186_v2, %v451_v15 }
  0xe3   :  { %v1718_v60 = vor.u32 %v1921_v49, %v1715_v54  ;;  %v1919_v49 = vld [vmem:[#allocation3 + $0x84] sm:$0xf] }
  0xe4   :  { %v283_v11 = vpop.f32.mrf.mxu2  ;;  %1087 = vmatmul.bf16.gmra.mxu2 %v2277_v5  ;;  %v332_v13 = vpop.f32.mrf.mxu3  ;;  %1136 = vmatmul.bf16.gmra.mxu3 %v2279_v9 }
  0xe5   :  { %v187_v14 = vpop.f32.mrf.mxu0  ;;  %v236_v18 = vpop.f32.mrf.mxu1  ;;  %v284_v22 = vadd.f32 %v283_v11, %v2179_v37  ;;  %v333_v26 = vadd.f32 %v332_v13, %v2181_v41  ;;  %1212 = vmatpush.bf16.msra.mxu1 %v1718_v60 }
  0xe6   :  { %v188_v16 = vadd.f32 %v187_v14, %v2175_v31  ;;  %v237_v19 = vadd.f32 %v236_v18, %v2173_v30 }
  0xe7   :  { %v453_v55 = vmul.f32 0.2, %v284_v22  ;;  %vm389_vm13 = vcmp.ge.f32.partialorder %v284_v22, 0.0  ;;  %v454_v61 = vmul.f32 0.2, %v333_v26  ;;  %vm390_vm14 = vcmp.ge.f32.partialorder %v333_v26, 0.0 }
  0xe8   :  { %vm391_vm11 = vcmp.ge.f32.partialorder %v188_v16, 0.0  ;;  %v455_v21 = vmul.f32 0.2, %v188_v16  ;;  %vm392_vm12 = vcmp.ge.f32.partialorder %v237_v19, 0.0  ;;  %v456_v23 = vmul.f32 0.2, %v237_v19 }
  0xe9   :  { %v517_v13 = vsel %vm389_vm13, %v284_v22, %v453_v55  ;;  %v1903_v22 = vld [vmem:[#allocation3 + $0x4] sm:$0xf] }
  0xea   :  { %v519_v32 = vsel %vm391_vm11, %v188_v16, %v455_v21  ;;  %v520_v39 = vsel %vm392_vm12, %v237_v19, %v456_v23  ;;  %v518_v16 = vsel %vm390_vm14, %v333_v26, %v454_v61 }
  0xeb   :  { %v2287_v38 = vpack.c.bf16 %v519_v32, %v515_v27  ;;  %v2289_v51 = vpack.c.bf16 %v520_v39, %v516_v24  ;;  %v1935_v32 = vld [vmem:[#allocation3 + $0x104] sm:$0xf]  ;;  %v1643_v39 = vld [vmem:[#allocation3 + $0x8] sm:$0xf0] }
  0xec   :  { %v285_v50 = vpop.f32.mrf.mxu2  ;;  %v334_v58 = vpop.f32.mrf.mxu3  ;;  %v1774_v26 = vor.u32 %v1935_v32, %v1771_v33  ;;  %v1646_v48 = vor.u32 %v1903_v22, %v1643_v39 }
  0xed   :  { %v286_v57 = vadd.f32 %v285_v50, %v2179_v37  ;;  %v190_v59 = vpop.f32.mrf.mxu0  ;;  %994 = vmatmul.bf16.gmra.mxu0 %v2287_v38  ;;  %v335_v63 = vadd.f32 %v334_v58, %v2181_v41  ;;  %v239_v2 = vpop.f32.mrf.mxu1  ;;  %1043 = vmatmul.bf16.gmra.mxu1 %v2289_v51  ;;  %v1707_v58 = vld [vmem:[#allocation3 + $0x88] sm:$0xf0] }
  0xee   :  { %v191_v11 = vadd.f32 %v190_v59, %v2175_v31  ;;  %v240_v12 = vadd.f32 %v239_v2, %v2173_v30  ;;  %1262 = vmatpush.bf16.msra.mxu2 %v1774_v26  ;;  %1164 = vmatpush.bf16.msra.mxu0 %v1646_v48 }
  0xef   :  { %vm393_vm15 = vcmp.ge.f32.partialorder %v286_v57, 0.0  ;;  %v457_v6 = vmul.f32 0.2, %v286_v57  ;;  %vm394_vm0 = vcmp.ge.f32.partialorder %v335_v63, 0.0  ;;  %v458_v8 = vmul.f32 0.2, %v335_v63 }
  0xf0   :  { %v459_v21 = vmul.f32 0.2, %v191_v11  ;;  %vm396_vm1 = vcmp.ge.f32.partialorder %v240_v12, 0.0  ;;  %v460_v23 = vmul.f32 0.2, %v240_v12  ;;  %vm395_vm2 = vcmp.ge.f32.partialorder %v191_v11, 0.0 }
  0xf1   :  { %v521_v14 = vsel %vm393_vm15, %v286_v57, %v457_v6  ;;  %v522_v18 = vsel %vm394_vm0, %v335_v63, %v458_v8  ;;  %v1838_v57 = vor.u32 %v1951_v42, %v1835_v46  ;;  %v1710_v63 = vor.u32 %v1919_v49, %v1707_v58 }
  0xf2   :  { %v2297_v15 = vpack.c.bf16 %v521_v14, %v517_v13  ;;  %v2299_v19 = vpack.c.bf16 %v522_v18, %v518_v16  ;;  %v524_v53 = vsel %vm396_vm1, %v240_v12, %v460_v23  ;;  %v523_v60 = vsel %vm395_vm2, %v191_v11, %v459_v21 }
  0xf3   :  { %1311 = vmatpush.bf16.msra.mxu3 %v1838_v57  ;;  %1213 = vmatpush.bf16.msra.mxu1 %v1710_v63 }
  0xf4   :  { %v288_v24 = vpop.f32.mrf.mxu2  ;;  %1092 = vmatmul.bf16.gmra.mxu2 %v2297_v15  ;;  %v337_v25 = vpop.f32.mrf.mxu3  ;;  %1141 = vmatmul.bf16.gmra.mxu3 %v2299_v19 }
  0xf5   :  { %v192_v27 = vpop.f32.mrf.mxu0  ;;  %v241_v36 = vpop.f32.mrf.mxu1  ;;  %v289_v54 = vadd.f32 %v288_v24, %v2179_v37  ;;  %v338_v59 = vadd.f32 %v337_v25, %v2181_v41 }
  0xf6   :  { %v193_v35 = vadd.f32 %v192_v27, %v2175_v31  ;;  %v242_v47 = vadd.f32 %v241_v36, %v2173_v30 }
  0xf7   :  { %v461_v12 = vmul.f32 0.2, %v289_v54  ;;  %vm397_vm5 = vcmp.ge.f32.partialorder %v289_v54, 0.0  ;;  %v462_v23 = vmul.f32 0.2, %v338_v59  ;;  %vm398_vm6 = vcmp.ge.f32.partialorder %v338_v59, 0.0 }
  0xf8   :  { %vm399_vm3 = vcmp.ge.f32.partialorder %v193_v35, 0.0  ;;  %v463_v50 = vmul.f32 0.2, %v193_v35  ;;  %vm400_vm4 = vcmp.ge.f32.partialorder %v242_v47, 0.0  ;;  %v464_v55 = vmul.f32 0.2, %v242_v47 }
  0xf9   :  { %v525_v32 = vsel %vm397_vm5, %v289_v54, %v461_v12  ;;  %v526_v36 = vsel %vm398_vm6, %v338_v59, %v462_v23 }
  0xfa   :  { %v527_v61 = vsel %vm399_vm3, %v193_v35, %v463_v50  ;;  %v528_v6 = vsel %vm400_vm4, %v242_v47, %v464_v55 }
  0xfb   :  { %v2308_v2 = vpack.c.bf16 %v527_v61, %v523_v60  ;;  %v2310_v13 = vpack.c.bf16 %v528_v6, %v524_v53 }
  0xfc   :  { %v290_v8 = vpop.f32.mrf.mxu2  ;;  %v339_v16 = vpop.f32.mrf.mxu3 }
  0xfd   :  { %v291_v14 = vadd.f32 %v290_v8, %v2179_v37  ;;  %v195_v18 = vpop.f32.mrf.mxu0  ;;  %999 = vmatmul.bf16.gmra.mxu0 %v2308_v2  ;;  %v340_v11 = vadd.f32 %v339_v16, %v2181_v41  ;;  %v244_v21 = vpop.f32.mrf.mxu1  ;;  %1048 = vmatmul.bf16.gmra.mxu1 %v2310_v13 }
  0xfe   :  { %v245_v27 = vadd.f32 %v244_v21, %v2173_v30  ;;  %v196_v22 = vadd.f32 %v195_v18, %v2175_v31 }
  0xff   :  { %vm401_vm7 = vcmp.ge.f32.partialorder %v291_v14, 0.0  ;;  %v465_v24 = vmul.f32 0.2, %v291_v14  ;;  %vm402_vm8 = vcmp.ge.f32.partialorder %v340_v11, 0.0  ;;  %v466_v25 = vmul.f32 0.2, %v340_v11 }
 0x100   :  { %v468_v46 = vmul.f32 0.2, %v245_v27  ;;  %v467_v49 = vmul.f32 0.2, %v196_v22  ;;  %vm404_vm9 = vcmp.ge.f32.partialorder %v245_v27, 0.0  ;;  %vm403_vm10 = vcmp.ge.f32.partialorder %v196_v22, 0.0 }
 0x101   :  { %v529_v33 = vsel %vm401_vm7, %v291_v14, %v465_v24  ;;  %v530_v26 = vsel %vm402_vm8, %v340_v11, %v466_v25 }
 0x102   :  { %v2318_v35 = vpack.c.bf16 %v529_v33, %v525_v32  ;;  %v2320_v39 = vpack.c.bf16 %v530_v26, %v526_v36  ;;  %v532_v59 = vsel %vm404_vm9, %v245_v27, %v468_v46  ;;  %v531_v61 = vsel %vm403_vm10, %v196_v22, %v467_v49 }
 0x104   :  { %v293_v42 = vpop.f32.mrf.mxu2  ;;  %1097 = vmatmul.bf16.gmra.mxu2 %v2318_v35  ;;  %v342_v47 = vpop.f32.mrf.mxu3  ;;  %1146 = vmatmul.bf16.gmra.mxu3 %v2320_v39 }
 0x105   :  { %v197_v48 = vpop.f32.mrf.mxu0  ;;  %v246_v53 = vpop.f32.mrf.mxu1  ;;  %v294_v57 = vadd.f32 %v293_v42, %v2179_v37  ;;  %v343_v60 = vadd.f32 %v342_v47, %v2181_v41 }
 0x106   :  { %v198_v50 = vadd.f32 %v197_v48, %v2175_v31  ;;  %v247_v54 = vadd.f32 %v246_v53, %v2173_v30 }
 0x107   :  { %v469_v14 = vmul.f32 0.2, %v294_v57  ;;  %vm405_vm13 = vcmp.ge.f32.partialorder %v294_v57, 0.0  ;;  %v470_v18 = vmul.f32 0.2, %v343_v60  ;;  %vm406_vm14 = vcmp.ge.f32.partialorder %v343_v60, 0.0 }
 0x108   :  { %vm407_vm11 = vcmp.ge.f32.partialorder %v198_v50, 0.0  ;;  %v471_v55 = vmul.f32 0.2, %v198_v50  ;;  %vm408_vm12 = vcmp.ge.f32.partialorder %v247_v54, 0.0  ;;  %v472_v58 = vmul.f32 0.2, %v247_v54 }
 0x109   :  { %v533_v24 = vsel %vm405_vm13, %v294_v57, %v469_v14  ;;  %v534_v32 = vsel %vm406_vm14, %v343_v60, %v470_v18 }
 0x10a   :  { %v535_v63 = vsel %vm407_vm11, %v198_v50, %v471_v55  ;;  %v536_v8 = vsel %vm408_vm12, %v247_v54, %v472_v58 }
 0x10b   :  { %v2328_v6 = vpack.c.bf16 %v535_v63, %v531_v61  ;;  %v2330_v31 = vpack.c.bf16 %v536_v8, %v532_v59 }
 0x10c   :  { %v295_v12 = vpop.f32.mrf.mxu2  ;;  %v344_v16 = vpop.f32.mrf.mxu3 }
 0x10d   :  { %v296_v30 = vadd.f32 %v295_v12, %v2179_v37  ;;  %1004 = vmatmul.bf16.gmra.mxu0 %v2328_v6  ;;  %v345_v23 = vadd.f32 %v344_v16, %v2181_v41  ;;  %1053 = vmatmul.bf16.gmra.mxu1 %v2330_v31  ;;  %v2344_v41 = vld [vmem:[%s2607_s4] sm:$0x3] }
 0x10e   :  { %v2348_v22 = vperm.slane %v2344_v41, 0 }
 0x10f   :  { %vm409_vm15 = vcmp.ge.f32.partialorder %v296_v30, 0.0  ;;  %v473_v11 = vmul.f32 0.2, %v296_v30  ;;  %vm410_vm0 = vcmp.ge.f32.partialorder %v345_v23, 0.0  ;;  %v474_v21 = vmul.f32 0.2, %v345_v23 }
 0x111   :  { %v537_v25 = vsel %vm409_vm15, %v296_v30, %v473_v11  ;;  %v538_v37 = vsel %vm410_vm0, %v345_v23, %v474_v21 }
 0x112   :  { %v2336_v27 = vpack.c.bf16 %v537_v25, %v533_v24  ;;  %v2338_v33 = vpack.c.bf16 %v538_v37, %v534_v32 }
 0x114   :  { %1102 = vmatmul.bf16.gmra.mxu2 %v2336_v27  ;;  %1151 = vmatmul.bf16.gmra.mxu3 %v2338_v33 }
 0x11a   :  { %v970_v36 = vpop.f32.mrf.mxu0  ;;  %v1019_v42 = vpop.f32.mrf.mxu1 }
 0x11b   :  { %v971_v26 = vadd.f32 %v970_v36, %v2348_v22 }
 0x11d   :  { %v1020_v46 = vadd.f32 %v1019_v42, %v971_v26  ;;  %1165 = vmatmul.bf16.vlgmr.msra.gmra.mxu0 %v2187_v56  ;;  %1214 = vmatmul.bf16.vlgmr.msra.gmra.mxu1 %v2189_v0 }
 0x122   :  { %v972_v47 = vpop.f32.mrf.mxu0  ;;  %v1021_v49 = vpop.f32.mrf.mxu1 }
 0x123   :  { %v973_v48 = vadd.f32 %v972_v47, %v2348_v22 }
 0x124   :  { %1263 = vmatmul.bf16.vlgmr.msra.gmra.mxu2 %v2197_v17  ;;  %1312 = vmatmul.bf16.vlgmr.msra.gmra.mxu3 %v2199_v20 }
 0x125   :  { %v1022_v50 = vadd.f32 %v1021_v49, %v973_v48 }
 0x127   :  { %v1068_v53 = vpop.f32.mrf.mxu2  ;;  %v1117_v55 = vpop.f32.mrf.mxu3 }
 0x128   :  { %v1069_v54 = vadd.f32 %v1068_v53, %v1020_v46 }
 0x12a   :  { %v2356_v57 = vadd.f32 %v1117_v55, %v1069_v54  ;;  %v975_v58 = vpop.f32.mrf.mxu0  ;;  %v1024_v56 = vpop.f32.mrf.mxu1 }
 0x12b   :  { %v976_v59 = vadd.f32 %v975_v58, %v2348_v22 }
 0x12c   :  { %vm1353_vm1 = vcmp.ge.f32.partialorder %v2356_v57, 0.0 }
 0x12d   :  { %v1025_v60 = vadd.f32 %v1024_v56, %v976_v59  ;;  %1170 = vmatmul.bf16.gmra.mxu0 %v2207_v44  ;;  %1219 = vmatmul.bf16.gmra.mxu1 %v2209_v52 }
 0x12f   :  { %v1070_v0 = vpop.f32.mrf.mxu2  ;;  %v1119_v17 = vpop.f32.mrf.mxu3 }
 0x130   :  { %v1071_v61 = vadd.f32 %v1070_v0, %v1022_v50 }
 0x132   :  { %v2361_v63 = vadd.f32 %v1119_v17, %v1071_v61  ;;  %v977_v20 = vpop.f32.mrf.mxu0  ;;  %v1026_v12 = vpop.f32.mrf.mxu1 }
 0x133   :  { %v978_v8 = vadd.f32 %v977_v20, %v2348_v22 }
 0x134   :  { %1268 = vmatmul.bf16.gmra.mxu2 %v2217_v7  ;;  %1317 = vmatmul.bf16.gmra.mxu3 %v2219_v10  ;;  %vm1355_vm3 = vcmp.ge.f32.partialorder %v2361_v63, 0.0 }
 0x135   :  { %v1027_v14 = vadd.f32 %v1026_v12, %v978_v8 }
 0x137   :  { %v1073_v30 = vpop.f32.mrf.mxu2  ;;  %v1122_v18 = vpop.f32.mrf.mxu3 }
 0x138   :  { %v1074_v16 = vadd.f32 %v1073_v30, %v1025_v60 }
 0x13a   :  { %v2366_v44 = vadd.f32 %v1122_v18, %v1074_v16  ;;  %v980_v52 = vpop.f32.mrf.mxu0  ;;  %v1029_v11 = vpop.f32.mrf.mxu1 }
 0x13b   :  { %v981_v23 = vadd.f32 %v980_v52, %v2348_v22 }
 0x13c   :  { %vm1357_vm5 = vcmp.ge.f32.partialorder %v2366_v44, 0.0 }
 0x13d   :  { %v1030_v21 = vadd.f32 %v1029_v11, %v981_v23  ;;  %1175 = vmatmul.bf16.gmra.mxu0 %v2227_v34  ;;  %1224 = vmatmul.bf16.gmra.mxu1 %v2229_v45 }
 0x13f   :  { %v1075_v24 = vpop.f32.mrf.mxu2  ;;  %v1124_v7 = vpop.f32.mrf.mxu3 }
 0x140   :  { %v1076_v25 = vadd.f32 %v1075_v24, %v1027_v14 }
 0x142   :  { %v2371_v32 = vadd.f32 %v1124_v7, %v1076_v25  ;;  %v982_v10 = vpop.f32.mrf.mxu0  ;;  %v1031_v36 = vpop.f32.mrf.mxu1 }
 0x143   :  { %v983_v37 = vadd.f32 %v982_v10, %v2348_v22 }
 0x144   :  { %1273 = vmatmul.bf16.gmra.mxu2 %v2237_v1  ;;  %1322 = vmatmul.bf16.gmra.mxu3 %v2239_v4  ;;  %vm1359_vm7 = vcmp.ge.f32.partialorder %v2371_v32, 0.0 }
 0x145   :  { %v1032_v26 = vadd.f32 %v1031_v36, %v983_v37 }
 0x147   :  { %v1078_v42 = vpop.f32.mrf.mxu2  ;;  %v1127_v47 = vpop.f32.mrf.mxu3 }
 0x148   :  { %v1079_v46 = vadd.f32 %v1078_v42, %v1030_v21 }
 0x14a   :  { %v2376_v34 = vadd.f32 %v1127_v47, %v1079_v46  ;;  %v985_v45 = vpop.f32.mrf.mxu0  ;;  %v1034_v49 = vpop.f32.mrf.mxu1 }
 0x14b   :  { %v986_v48 = vadd.f32 %v985_v45, %v2348_v22 }
 0x14c   :  { %vm1361_vm9 = vcmp.ge.f32.partialorder %v2376_v34, 0.0 }
 0x14d   :  { %v1035_v50 = vadd.f32 %v1034_v49, %v986_v48  ;;  %1180 = vmatmul.bf16.gmra.mxu0 %v2247_v28  ;;  %1229 = vmatmul.bf16.gmra.mxu1 %v2249_v40 }
 0x14f   :  { %v1080_v53 = vpop.f32.mrf.mxu2  ;;  %v1129_v1 = vpop.f32.mrf.mxu3 }
 0x150   :  { %v1081_v54 = vadd.f32 %v1080_v53, %v1032_v26 }
 0x152   :  { %v2381_v55 = vadd.f32 %v1129_v1, %v1081_v54  ;;  %v987_v4 = vpop.f32.mrf.mxu0  ;;  %v1036_v59 = vpop.f32.mrf.mxu1 }
 0x153   :  { %v988_v58 = vadd.f32 %v987_v4, %v2348_v22 }
 0x154   :  { %1278 = vmatmul.bf16.gmra.mxu2 %v2257_v62  ;;  %1327 = vmatmul.bf16.gmra.mxu3 %v2259_v3  ;;  %vm1363_vm11 = vcmp.ge.f32.partialorder %v2381_v55, 0.0 }
 0x155   :  { %v1037_v56 = vadd.f32 %v1036_v59, %v988_v58 }
 0x157   :  { %v1083_v60 = vpop.f32.mrf.mxu2  ;;  %v1132_v61 = vpop.f32.mrf.mxu3 }
 0x158   :  { %v1084_v0 = vadd.f32 %v1083_v60, %v1035_v50 }
 0x15a   :  { %v2386_v28 = vadd.f32 %v1132_v61, %v1084_v0  ;;  %v990_v40 = vpop.f32.mrf.mxu0  ;;  %v1039_v20 = vpop.f32.mrf.mxu1 }
 0x15b   :  { %v991_v17 = vadd.f32 %v990_v40, %v2348_v22 }
 0x15c   :  { %vm1365_vm13 = vcmp.ge.f32.partialorder %v2386_v28, 0.0 }
 0x15d   :  { %v1040_v8 = vadd.f32 %v1039_v20, %v991_v17  ;;  %1185 = vmatmul.bf16.gmra.mxu0 %v2267_v29  ;;  %1234 = vmatmul.bf16.gmra.mxu1 %v2269_v43 }
 0x15f   :  { %v1085_v12 = vpop.f32.mrf.mxu2  ;;  %v1134_v62 = vpop.f32.mrf.mxu3 }
 0x160   :  { %v1086_v14 = vadd.f32 %v1085_v12, %v1037_v56 }
 0x162   :  { %v2391_v30 = vadd.f32 %v1134_v62, %v1086_v14  ;;  %v992_v3 = vpop.f32.mrf.mxu0  ;;  %v1041_v18 = vpop.f32.mrf.mxu1 }
 0x163   :  { %v993_v16 = vadd.f32 %v992_v3, %v2348_v22 }
 0x164   :  { %1283 = vmatmul.bf16.gmra.mxu2 %v2277_v5  ;;  %1332 = vmatmul.bf16.gmra.mxu3 %v2279_v9  ;;  %vm1367_vm15 = vcmp.ge.f32.partialorder %v2391_v30, 0.0 }
 0x165   :  { %v1042_v52 = vadd.f32 %v1041_v18, %v993_v16 }
 0x167   :  { %v1088_v23 = vpop.f32.mrf.mxu2  ;;  %v1137_v21 = vpop.f32.mrf.mxu3 }
 0x168   :  { %v1089_v11 = vadd.f32 %v1088_v23, %v1040_v8 }
 0x16a   :  { %v2396_v29 = vadd.f32 %v1137_v21, %v1089_v11  ;;  %v995_v43 = vpop.f32.mrf.mxu0  ;;  %v1044_v25 = vpop.f32.mrf.mxu1  ;;  %v2429_v21 = vperm.slane %v2344_v41, 1  ;;  %v1449_v41 = vld [vmem:[%s2608_s5] sm:$0x3] }
 0x16b   :  { %v996_v24 = vadd.f32 %v995_v43, %v2348_v22 }
 0x16d   :  { %v1045_v7 = vadd.f32 %v1044_v25, %v996_v24  ;;  %1190 = vmatmul.bf16.gmra.mxu0 %v2287_v38  ;;  %1239 = vmatmul.bf16.gmra.mxu1 %v2289_v51 }
 0x16f   :  { %v1090_v10 = vpop.f32.mrf.mxu2  ;;  %v1139_v5 = vpop.f32.mrf.mxu3 }
 0x170   :  { %v1091_v37 = vadd.f32 %v1090_v10, %v1042_v52 }
 0x172   :  { %v2401_v36 = vadd.f32 %v1139_v5, %v1091_v37  ;;  %v997_v9 = vpop.f32.mrf.mxu0  ;;  %v1046_v42 = vpop.f32.mrf.mxu1  ;;  %v1385_v5 = vmul.f32 0.2, %v2356_v57 }
 0x173   :  { %v998_v26 = vadd.f32 %v997_v9, %v2348_v22 }
 0x174   :  { %1288 = vmatmul.bf16.gmra.mxu2 %v2297_v15  ;;  %1337 = vmatmul.bf16.gmra.mxu3 %v2299_v19 }
 0x175   :  { %v1047_v46 = vadd.f32 %v1046_v42, %v998_v26 }
 0x177   :  { %v1093_v47 = vpop.f32.mrf.mxu2  ;;  %v1142_v48 = vpop.f32.mrf.mxu3 }
 0x178   :  { %v1094_v45 = vadd.f32 %v1093_v47, %v1045_v7 }
 0x17a   :  { %v2406_v38 = vadd.f32 %v1142_v48, %v1094_v45  ;;  %v1000_v51 = vpop.f32.mrf.mxu0  ;;  %v1049_v50 = vpop.f32.mrf.mxu1  ;;  %v2440_v48 = vperm.slane %v1449_v41, 0 }
 0x17b   :  { %v1001_v49 = vadd.f32 %v1000_v51, %v2348_v22  ;;  %v2442_v51 = vperm.slane %v1449_v41, 1 }
 0x17d   :  { %v1050_v53 = vadd.f32 %v1049_v50, %v1001_v49  ;;  %1195 = vmatmul.bf16.gmra.mxu0 %v2308_v2  ;;  %1244 = vmatmul.bf16.gmra.mxu1 %v2310_v13  ;;  %v1417_v50 = vsel %vm1353_vm1, %v2356_v57, %v1385_v5  ;;  %vm1369_vm1 = vcmp.ge.f32.partialorder %v2396_v29, 0.0 }
 0x17f   :  { %v1095_v54 = vpop.f32.mrf.mxu2  ;;  %v1144_v15 = vpop.f32.mrf.mxu3 }
 0x180   :  { %v1096_v1 = vadd.f32 %v1095_v54, %v1047_v46 }
 0x182   :  { %v2411_v4 = vadd.f32 %v1144_v15, %v1096_v1  ;;  %v1002_v19 = vpop.f32.mrf.mxu0  ;;  %v1051_v59 = vpop.f32.mrf.mxu1  ;;  %v1455_v15 = vmul.f32 %v2440_v48, %v1417_v50 }
 0x183   :  { %v1003_v58 = vadd.f32 %v1002_v19, %v2348_v22 }
 0x184   :  { %1293 = vmatmul.bf16.gmra.mxu2 %v2318_v35  ;;  %1342 = vmatmul.bf16.gmra.mxu3 %v2320_v39 }
 0x185   :  { %v1052_v56 = vadd.f32 %v1051_v59, %v1003_v58  ;;  %v1387_v58 = vmul.f32 0.2, %v2361_v63 }
 0x187   :  { %v1098_v60 = vpop.f32.mrf.mxu2  ;;  %v1147_v61 = vpop.f32.mrf.mxu3 }
 0x188   :  { %v1099_v0 = vadd.f32 %v1098_v60, %v1050_v53 }
 0x18a   :  { %v2416_v2 = vadd.f32 %v1147_v61, %v1099_v0  ;;  %v1005_v13 = vpop.f32.mrf.mxu0  ;;  %v1054_v17 = vpop.f32.mrf.mxu1 }
 0x18b   :  { %v1006_v40 = vadd.f32 %v1005_v13, %v2348_v22 }
 0x18d   :  { %v1055_v20 = vadd.f32 %v1054_v17, %v1006_v40  ;;  %1200 = vmatmul.bf16.gmra.mxu0 %v2328_v6  ;;  %1249 = vmatmul.bf16.gmra.mxu1 %v2330_v31  ;;  %v1419_v17 = vsel %vm1355_vm3, %v2361_v63, %v1387_v58  ;;  %vm1371_vm3 = vcmp.ge.f32.partialorder %v2401_v36, 0.0 }
 0x18f   :  { %v1100_v8 = vpop.f32.mrf.mxu2  ;;  %v1149_v35 = vpop.f32.mrf.mxu3 }
 0x190   :  { %v1101_v12 = vadd.f32 %v1100_v8, %v1052_v56 }
 0x192   :  { %v2421_v14 = vadd.f32 %v1149_v35, %v1101_v12  ;;  %v1007_v39 = vpop.f32.mrf.mxu0  ;;  %v1056_v3 = vpop.f32.mrf.mxu1  ;;  %v1457_v35 = vmul.f32 %v2440_v48, %v1419_v17 }
 0x193   :  { %v1008_v62 = vadd.f32 %v1007_v39, %v2348_v22 }
 0x194   :  { %1298 = vmatmul.bf16.gmra.mxu2 %v2336_v27  ;;  %1347 = vmatmul.bf16.gmra.mxu3 %v2338_v33 }
 0x195   :  { %v1057_v16 = vadd.f32 %v1056_v3, %v1008_v62  ;;  %v1389_v62 = vmul.f32 0.2, %v2366_v44 }
 0x197   :  { %v1103_v18 = vpop.f32.mrf.mxu2  ;;  %v1152_v23 = vpop.f32.mrf.mxu3 }
 0x198   :  { %v1104_v52 = vadd.f32 %v1103_v18, %v1055_v20 }
 0x19a   :  { %v2426_v6 = vadd.f32 %v1152_v23, %v1104_v52  ;;  %v1166_v31 = vpop.f32.mrf.mxu0  ;;  %v1215_v11 = vpop.f32.mrf.mxu1 }
 0x19b   :  { %v1167_v22 = vadd.f32 %v1166_v31, %v2429_v21 }
 0x19d   :  { %v1216_v33 = vadd.f32 %v1215_v11, %v1167_v22 }
 0x19f   :  { %v1105_v43 = vpop.f32.mrf.mxu2  ;;  %v1154_v25 = vpop.f32.mrf.mxu3 }
 0x1a0   :  { %v1106_v24 = vadd.f32 %v1105_v43, %v1057_v16  ;;  %v1421_v43 = vsel %vm1357_vm5, %v2366_v44, %v1389_v62  ;;  %vm1373_vm5 = vcmp.ge.f32.partialorder %v2406_v38, 0.0 }
 0x1a2   :  { %v2432_v7 = vadd.f32 %v1154_v25, %v1106_v24  ;;  %v1168_v27 = vpop.f32.mrf.mxu0  ;;  %v1217_v10 = vpop.f32.mrf.mxu1 }
 0x1a3   :  { %v1169_v42 = vadd.f32 %v1168_v27, %v2429_v21  ;;  %v1459_v27 = vmul.f32 %v2440_v48, %v1421_v43 }
 0x1a5   :  { %v1218_v53 = vadd.f32 %v1217_v10, %v1169_v42 }
 0x1a7   :  { %v1264_v37 = vpop.f32.mrf.mxu2  ;;  %v1313_v26 = vpop.f32.mrf.mxu3 }
 0x1a8   :  { %v1265_v9 = vadd.f32 %v1264_v37, %v1216_v33  ;;  %v1391_v33 = vmul.f32 0.2, %v2371_v32 }
 0x1aa   :  { %v1314_v46 = vadd.f32 %v1313_v26, %v1265_v9  ;;  %v1171_v47 = vpop.f32.mrf.mxu0  ;;  %v1220_v45 = vpop.f32.mrf.mxu1 }
 0x1ab   :  { %v1172_v0 = vadd.f32 %v1171_v47, %v2429_v21  ;;  %v1423_v47 = vsel %vm1359_vm7, %v2371_v32, %v1391_v33  ;;  %vm1375_vm7 = vcmp.ge.f32.partialorder %v2411_v4, 0.0 }
 0x1ac   :  { %vm1354_vm2 = vcmp.ge.f32.partialorder %v1314_v46, 0.0  ;;  %v1386_v49 = vmul.f32 0.2, %v1314_v46 }
 0x1ad   :  { %v1221_v20 = vadd.f32 %v1220_v45, %v1172_v0 }
 0x1ae   :  { %v1418_v54 = vsel %vm1354_vm2, %v1314_v46, %v1386_v49 }
 0x1af   :  { %v1266_v1 = vpop.f32.mrf.mxu2  ;;  %v1456_v19 = vmul.f32 %v2442_v51, %v1418_v54  ;;  %v1315_v56 = vpop.f32.mrf.mxu3 }
 0x1b0   :  { %v1267_v59 = vadd.f32 %v1266_v1, %v1218_v53  ;;  %v1461_v53 = vmul.f32 %v2440_v48, %v1423_v47  ;;  %v1393_v1 = vmul.f32 0.2, %v2376_v34  ;;  %v1399_v47 = vmul.f32 0.2, %v2391_v30 }
 0x1b1   :  { %v1487_v60 = vadd.f32 %v1456_v19, %v1455_v15 }
 0x1b2   :  { %v1316_v61 = vadd.f32 %v1315_v56, %v1267_v59  ;;  %v1173_v13 = vpop.f32.mrf.mxu0  ;;  %v1222_v40 = vpop.f32.mrf.mxu1 }
 0x1b3   :  { %1488 = vadd.xlane.f32.xlu0 %v1487_v60  ;;  %v1174_v52 = vadd.f32 %v1173_v13, %v2429_v21 }
 0x1b4   :  { %vm1356_vm4 = vcmp.ge.f32.partialorder %v1316_v61, 0.0  ;;  %v1388_v57 = vmul.f32 0.2, %v1316_v61 }
 0x1b5   :  { %v1223_v24 = vadd.f32 %v1222_v40, %v1174_v52 }
 0x1b6   :  { %v1420_v8 = vsel %vm1356_vm4, %v1316_v61, %v1388_v57  ;;  %v1425_v61 = vsel %vm1361_vm9, %v2376_v34, %v1393_v1  ;;  %vm1377_vm9 = vcmp.ge.f32.partialorder %v2416_v2, 0.0 }
 0x1b7   :  { %v1269_v12 = vpop.f32.mrf.mxu2  ;;  %v1458_v39 = vmul.f32 %v2442_v51, %v1420_v8  ;;  %v1318_v16 = vpop.f32.mrf.mxu3  ;;  %v1463_v17 = vmul.f32 %v2440_v48, %v1425_v61  ;;  %v1395_v8 = vmul.f32 0.2, %v2381_v55 }
 0x1b8   :  { %v1270_v3 = vadd.f32 %v1269_v12, %v1221_v20 }
 0x1b9   :  { %v1490_v18 = vadd.f32 %v1458_v39, %v1457_v35  ;;  %v1427_v52 = vsel %vm1363_vm11, %v2381_v55, %v1395_v8  ;;  %vm1379_vm11 = vcmp.ge.f32.partialorder %v2421_v14, 0.0 }
 0x1ba   :  { %v1319_v23 = vadd.f32 %v1318_v16, %v1270_v3  ;;  %v1176_v31 = vpop.f32.mrf.mxu0  ;;  %v1225_v11 = vpop.f32.mrf.mxu1 }
 0x1bb   :  { %1491 = vadd.xlane.f32.xlu0 %v1490_v18  ;;  %v1177_v26 = vadd.f32 %v1176_v31, %v2429_v21 }
 0x1bc   :  { %vm1358_vm6 = vcmp.ge.f32.partialorder %v1319_v23, 0.0  ;;  %v1390_v63 = vmul.f32 0.2, %v1319_v23 }
 0x1bd   :  { %v1226_v45 = vadd.f32 %v1225_v11, %v1177_v26 }
 0x1be   :  { %v1422_v25 = vsel %vm1358_vm6, %v1319_v23, %v1390_v63  ;;  %v1465_v63 = vmul.f32 %v2440_v48, %v1427_v52 }
 0x1bf   :  { %v1271_v22 = vpop.f32.mrf.mxu2  ;;  %v1460_v10 = vmul.f32 %v2442_v51, %v1422_v25  ;;  %v1320_v5 = vpop.f32.mrf.mxu3 }
 0x1c0   :  { %v1272_v37 = vadd.f32 %v1271_v22, %v1223_v24  ;;  %v1397_v24 = vmul.f32 0.2, %v2386_v28 }
 0x1c1   :  { %v1493_v9 = vadd.f32 %v1460_v10, %v1459_v27 }
 0x1c2   :  { %v1321_v41 = vadd.f32 %v1320_v5, %v1272_v37  ;;  %v1178_v42 = vpop.f32.mrf.mxu0  ;;  %v1227_v46 = vpop.f32.mrf.mxu1 }
 0x1c3   :  { %1494 = vadd.xlane.f32.xlu1 %v1493_v9  ;;  %v1179_v59 = vadd.f32 %v1178_v42, %v2429_v21  ;;  %v1429_v9 = vsel %vm1365_vm13, %v2386_v28, %v1397_v24  ;;  %vm1381_vm13 = vcmp.ge.f32.partialorder %v2426_v6, 0.0 }
 0x1c4   :  { %vm1360_vm8 = vcmp.ge.f32.partialorder %v1321_v41, 0.0  ;;  %v1392_v44 = vmul.f32 0.2, %v1321_v41 }
 0x1c5   :  { %v1228_v13 = vadd.f32 %v1227_v46, %v1179_v59  ;;  %v1467_v46 = vmul.f32 %v2440_v48, %v1429_v9 }
 0x1c6   :  { %v1424_v49 = vsel %vm1360_vm8, %v1321_v41, %v1392_v44 }
 0x1c7   :  { %v1274_v50 = vpop.f32.mrf.mxu2  ;;  %v1462_v54 = vmul.f32 %v2442_v51, %v1424_v49  ;;  %v1323_v19 = vpop.f32.mrf.mxu3 }
 0x1c8   :  { %v1275_v15 = vadd.f32 %v1274_v50, %v1226_v45 }
 0x1c9   :  { %v1496_v58 = vadd.f32 %v1462_v54, %v1461_v53 }
 0x1ca   :  { %v1324_v56 = vadd.f32 %v1323_v19, %v1275_v15  ;;  %v1181_v60 = vpop.f32.mrf.mxu0  ;;  %v1230_v0 = vpop.f32.mrf.mxu1  ;;  %v1431_v19 = vsel %vm1367_vm15, %v2391_v30, %v1399_v47  ;;  %vm1383_vm15 = vcmp.ge.f32.partialorder %v2432_v7, 0.0 }
 0x1cb   :  { %1497 = vadd.xlane.f32.xlu1 %v1496_v58  ;;  %v1182_v62 = vadd.f32 %v1181_v60, %v2429_v21  ;;  %v1469_v60 = vmul.f32 %v2440_v48, %v1431_v19 }
 0x1cc   :  { %vm1362_vm10 = vcmp.ge.f32.partialorder %v1324_v56, 0.0  ;;  %v1394_v32 = vmul.f32 0.2, %v1324_v56 }
 0x1cd   :  { %v1231_v23 = vadd.f32 %v1230_v0, %v1182_v62 }
 0x1ce   :  { %v1426_v40 = vsel %vm1362_vm10, %v1324_v56, %v1394_v32  ;;  %v1401_v32 = vmul.f32 0.2, %v2396_v29 }
 0x1cf   :  { %v1276_v57 = vpop.f32.mrf.mxu2  ;;  %v1464_v20 = vmul.f32 %v2442_v51, %v1426_v40  ;;  %v1325_v35 = vpop.f32.mrf.mxu3 }
 0x1d0   :  { %v1277_v12 = vadd.f32 %v1276_v57, %v1228_v13 }
 0x1d1   :  { %v1499_v39 = vadd.f32 %v1464_v20, %v1463_v17 }
 0x1d2   :  { %v1326_v3 = vadd.f32 %v1325_v35, %v1277_v12  ;;  %v1183_v16 = vpop.f32.mrf.mxu0  ;;  %v1232_v18 = vpop.f32.mrf.mxu1  ;;  %v1433_v12 = vsel %vm1369_vm1, %v2396_v29, %v1401_v32  ;;  %vm1553_vm1 = vcmask 7168  }
 0x1d3   :  { %1500 = vadd.xlane.f32.xlu2 %v1499_v39  ;;  %v1184_v10 = vadd.f32 %v1183_v16, %v2429_v21 }
 0x1d4   :  { %vm1364_vm12 = vcmp.ge.f32.partialorder %v1326_v3, 0.0  ;;  %v1396_v34 = vmul.f32 0.2, %v1326_v3 }
 0x1d5   :  { %v1233_v26 = vadd.f32 %v1232_v18, %v1184_v10  ;;  %v1403_v18 = vmul.f32 0.2, %v2401_v36 }
 0x1d6   :  { %v1428_v31 = vsel %vm1364_vm12, %v1326_v3, %v1396_v34  ;;  %v1471_v3 = vmul.f32 %v2440_v48, %v1433_v12 }
 0x1d7   :  { %v1279_v11 = vpop.f32.mrf.mxu2  ;;  %v1466_v43 = vmul.f32 %v2442_v51, %v1428_v31  ;;  %v1328_v22 = vpop.f32.mrf.mxu3 }
 0x1d8   :  { %v1280_v25 = vadd.f32 %v1279_v11, %v1231_v23 }
 0x1d9   :  { %v1502_v27 = vadd.f32 %v1466_v43, %v1465_v63  ;;  %v1435_v43 = vsel %vm1371_vm3, %v2401_v36, %v1403_v18 }
 0x1da   :  { %v1329_v33 = vadd.f32 %v1328_v22, %v1280_v25  ;;  %v1186_v37 = vpop.f32.mrf.mxu0  ;;  %v1235_v5 = vpop.f32.mrf.mxu1  ;;  %v1473_v10 = vmul.f32 %v2440_v48, %v1435_v43 }
 0x1db   :  { %1503 = vadd.xlane.f32.xlu2 %v1502_v27  ;;  %v1187_v53 = vadd.f32 %v1186_v37, %v2429_v21  ;;  %v1405_v37 = vmul.f32 0.2, %v2406_v38 }
 0x1dc   :  { %vm1366_vm14 = vcmp.ge.f32.partialorder %v1329_v33, 0.0  ;;  %v1398_v55 = vmul.f32 0.2, %v1329_v33 }
 0x1dd   :  { %v1236_v58 = vadd.f32 %v1235_v5, %v1187_v53 }
 0x1de   :  { %v1430_v41 = vsel %vm1366_vm14, %v1329_v33, %v1398_v55 }
 0x1df   :  { %v1281_v42 = vpop.f32.mrf.mxu2  ;;  %v1468_v44 = vmul.f32 %v2442_v51, %v1430_v41  ;;  %v1330_v49 = vpop.f32.mrf.mxu3 }
 0x1e0   :  { %v1282_v45 = vadd.f32 %v1281_v42, %v1233_v26 }
 0x1e1   :  { %v1505_v50 = vadd.f32 %v1468_v44, %v1467_v46  ;;  %v1437_v46 = vsel %vm1373_vm5, %v2406_v38, %v1405_v37 }
 0x1e2   :  { %v1331_v54 = vadd.f32 %v1330_v49, %v1282_v45  ;;  %v1188_v1 = vpop.f32.mrf.mxu0  ;;  %v1237_v15 = vpop.f32.mrf.mxu1 }
 0x1e3   :  { %1506 = vadd.xlane.f32.xlu0 %v1505_v50  ;;  %v1189_v57 = vadd.f32 %v1188_v1, %v2429_v21  ;;  %v1475_v50 = vmul.f32 %v2440_v48, %v1437_v46 }
 0x1e4   :  { %vm1368_vm0 = vcmp.ge.f32.partialorder %v1331_v54, 0.0  ;;  %v1400_v28 = vmul.f32 0.2, %v1331_v54 }
 0x1e5   :  { %v1238_v35 = vadd.f32 %v1237_v15, %v1189_v57 }
 0x1e6   :  { %v1432_v59 = vsel %vm1368_vm0, %v1331_v54, %v1400_v28  ;;  %v1407_v54 = vmul.f32 0.2, %v2411_v4 }
 0x1e7   :  { %v1284_v56 = vpop.f32.mrf.mxu2  ;;  %v1470_v0 = vmul.f32 %v2442_v51, %v1432_v59  ;;  %v1333_v13 = vpop.f32.mrf.mxu3 }
 0x1e8   :  { %v1285_v61 = vadd.f32 %v1284_v56, %v1236_v58  ;;  %v1439_v56 = vsel %vm1375_vm7, %v2411_v4, %v1407_v54 }
 0x1e9   :  { %v1508_v40 = vadd.f32 %v1470_v0, %v1469_v60 }
 0x1ea   :  { %v1334_v17 = vadd.f32 %v1333_v13, %v1285_v61  ;;  %v1191_v20 = vpop.f32.mrf.mxu0  ;;  %v1240_v8 = vpop.f32.mrf.mxu1  ;;  %v1477_v61 = vmul.f32 %v2440_v48, %v1439_v56 }
 0x1eb   :  { %1509 = vadd.xlane.f32.xlu1 %v1508_v40  ;;  %v1192_v31 = vadd.f32 %v1191_v20, %v2429_v21  ;;  %v1409_v40 = vmul.f32 0.2, %v2416_v2 }
 0x1ec   :  { %vm1370_vm2 = vcmp.ge.f32.partialorder %v1334_v17, 0.0  ;;  %v1402_v30 = vmul.f32 0.2, %v1334_v17 }
 0x1ed   :  { %v1241_v25 = vadd.f32 %v1240_v8, %v1192_v31 }
 0x1ee   :  { %v1434_v39 = vsel %vm1370_vm2, %v1334_v17, %v1402_v30 }
 0x1ef   :  { %v1286_v62 = vpop.f32.mrf.mxu2  ;;  %v1472_v16 = vmul.f32 %v2442_v51, %v1434_v39  ;;  %v1335_v52 = vpop.f32.mrf.mxu3 }
 0x1f0   :  { %v1287_v34 = vadd.f32 %v1286_v62, %v1238_v35  ;;  %v1441_v35 = vsel %vm1377_vm9, %v2416_v2, %v1409_v40 }
 0x1f1   :  { %v1511_v23 = vadd.f32 %v1472_v16, %v1471_v3  ;;  %v1479_v18 = vmul.f32 %v2440_v48, %v1441_v35 }
 0x1f2   :  { %v1336_v11 = vadd.f32 %v1335_v52, %v1287_v34  ;;  %v1193_v63 = vpop.f32.mrf.mxu0  ;;  %v1242_v24 = vpop.f32.mrf.mxu1  ;;  %v1411_v52 = vmul.f32 0.2, %v2421_v14 }
 0x1f3   :  { %1512 = vadd.xlane.f32.xlu2 %v1511_v23  ;;  %v1194_v26 = vadd.f32 %v1193_v63, %v2429_v21 }
 0x1f4   :  { %vm1372_vm4 = vcmp.ge.f32.partialorder %v1336_v11, 0.0  ;;  %v1404_v29 = vmul.f32 0.2, %v1336_v11 }
 0x1f5   :  { %v1243_v44 = vadd.f32 %v1242_v24, %v1194_v26  ;;  %v1443_v24 = vsel %vm1379_vm11, %v2421_v14, %v1411_v52 }
 0x1f6   :  { %v1436_v22 = vsel %vm1372_vm4, %v1336_v11, %v1404_v29 }
 0x1f7   :  { %v1289_v27 = vpop.f32.mrf.mxu2  ;;  %v1474_v33 = vmul.f32 %v2442_v51, %v1436_v22  ;;  %v1338_v55 = vpop.f32.mrf.mxu3 }
 0x1f8   :  { %v1290_v5 = vadd.f32 %v1289_v27, %v1241_v25 }
 0x1f9   :  { %v1514_v9 = vadd.f32 %v1474_v33, %v1473_v10  ;;  %v1481_v33 = vmul.f32 %v2440_v48, %v1443_v24 }
 0x1fa   :  { %v1339_v41 = vadd.f32 %v1338_v55, %v1290_v5  ;;  %v1196_v42 = vpop.f32.mrf.mxu0  ;;  %v1245_v45 = vpop.f32.mrf.mxu1  ;;  %v1413_v5 = vmul.f32 0.2, %v2426_v6 }
 0x1fb   :  { %1515 = vadd.xlane.f32.xlu0 %v1514_v9  ;;  %v1197_v19 = vadd.f32 %v1196_v42, %v2429_v21 }
 0x1fc   :  { %vm1374_vm6 = vcmp.ge.f32.partialorder %v1339_v41, 0.0  ;;  %v1406_v36 = vmul.f32 0.2, %v1339_v41 }
 0x1fd   :  { %v1246_v60 = vadd.f32 %v1245_v45, %v1197_v19 }
 0x1fe   :  { %v1438_v47 = vsel %vm1374_vm6, %v1339_v41, %v1406_v36  ;;  %v1445_v36 = vsel %vm1381_vm13, %v2426_v6, %v1413_v5  ;;  %v1536_v6 = vstv %s2609_s6 }
 0x1ff   :  { %v1291_v49 = vpop.f32.mrf.mxu2  ;;  %v1476_v53 = vmul.f32 %v2442_v51, %v1438_v47  ;;  %v1340_v15 = vpop.f32.mrf.mxu3 }
 0x200   :  { %v1292_v1 = vadd.f32 %v1291_v49, %v1243_v44  ;;  %v1483_v49 = vmul.f32 %v2440_v48, %v1445_v36 }
 0x201   :  { %v1517_v28 = vadd.f32 %v1476_v53, %v1475_v50  ;;  %v1415_v53 = vmul.f32 0.2, %v2432_v7 }
 0x202   :  { %v1341_v58 = vadd.f32 %v1340_v15, %v1292_v1  ;;  %v1198_v59 = vpop.f32.mrf.mxu0  ;;  %v1247_v20 = vpop.f32.mrf.mxu1 }
 0x203   :  { %1518 = vadd.xlane.f32.xlu1 %v1517_v28  ;;  %v1199_v30 = vadd.f32 %v1198_v59, %v2429_v21  ;;  %v1447_v19 = vsel %vm1383_vm15, %v2432_v7, %v1415_v53 }
 0x204   :  { %vm1376_vm8 = vcmp.ge.f32.partialorder %v1341_v58, 0.0  ;;  %v1408_v38 = vmul.f32 0.2, %v1341_v58  ;;  %v1485_v56 = vmul.f32 %v2440_v48, %v1447_v19 }
 0x205   :  { %v1248_v62 = vadd.f32 %v1247_v20, %v1199_v30 }
 0x206   :  { %v1440_v0 = vsel %vm1376_vm8, %v1341_v58, %v1408_v38 }
 0x207   :  { %v1294_v32 = vpop.f32.mrf.mxu2  ;;  %v1478_v13 = vmul.f32 %v2442_v51, %v1440_v0  ;;  %v1343_v17 = vpop.f32.mrf.mxu3 }
 0x208   :  { %v1295_v57 = vadd.f32 %v1294_v32, %v1246_v60 }
 0x209   :  { %v1520_v8 = vadd.f32 %v1478_v13, %v1477_v61 }
 0x20a   :  { %v1344_v12 = vadd.f32 %v1343_v17, %v1295_v57  ;;  %v1201_v39 = vpop.f32.mrf.mxu0  ;;  %v1250_v43 = vpop.f32.mrf.mxu1 }
 0x20b   :  { %1521 = vadd.xlane.f32.xlu2 %v1520_v8  ;;  %v1202_v63 = vadd.f32 %v1201_v39, %v2429_v21 }
 0x20c   :  { %vm1378_vm10 = vcmp.ge.f32.partialorder %v1344_v12, 0.0  ;;  %v1410_v4 = vmul.f32 0.2, %v1344_v12 }
 0x20d   :  { %v1251_v25 = vadd.f32 %v1250_v43, %v1202_v63 }
 0x20e   :  { %v1442_v3 = vsel %vm1378_vm10, %v1344_v12, %v1410_v4 }
 0x20f   :  { %v1296_v16 = vpop.f32.mrf.mxu2  ;;  %v1480_v34 = vmul.f32 %v2442_v51, %v1442_v3  ;;  %v1345_v31 = vpop.f32.mrf.mxu3 }
 0x210   :  { %v1297_v23 = vadd.f32 %v1296_v16, %v1248_v62 }
 0x211   :  { %v1523_v11 = vadd.f32 %v1480_v34, %v1479_v18 }
 0x212   :  { %v1346_v29 = vadd.f32 %v1345_v31, %v1297_v23  ;;  %v1203_v27 = vpop.f32.mrf.mxu0  ;;  %v1252_v46 = vpop.f32.mrf.mxu1 }
 0x213   :  { %1524 = vadd.xlane.f32.xlu0 %v1523_v11  ;;  %v1204_v41 = vadd.f32 %v1203_v27, %v2429_v21 }
 0x214   :  { %vm1380_vm12 = vcmp.ge.f32.partialorder %v1346_v29, 0.0  ;;  %v1412_v2 = vmul.f32 0.2, %v1346_v29 }
 0x215   :  { %v1253_v44 = vadd.f32 %v1252_v46, %v1204_v41 }
 0x216   :  { %v1444_v22 = vsel %vm1380_vm12, %v1346_v29, %v1412_v2 }
 0x217   :  { %v1299_v10 = vpop.f32.mrf.mxu2  ;;  %v1482_v37 = vmul.f32 %v2442_v51, %v1444_v22  ;;  %v1348_v9 = vpop.f32.mrf.mxu3 }
 0x218   :  { %v1300_v55 = vadd.f32 %v1299_v10, %v1251_v25 }
 0x219   :  { %v1526_v26 = vadd.f32 %v1482_v37, %v1481_v33 }
 0x21a   :  { %v1349_v42 = vadd.f32 %v1348_v9, %v1300_v55 }
 0x21b   :  { %1527 = vadd.xlane.f32.xlu1 %v1526_v26 }
 0x21c   :  { %vm1382_vm14 = vcmp.ge.f32.partialorder %v1349_v42, 0.0  ;;  %v1414_v14 = vmul.f32 0.2, %v1349_v42 }
 0x21e   :  { %v1446_v47 = vsel %vm1382_vm14, %v1349_v42, %v1414_v14 }
 0x21f   :  { %v1301_v45 = vpop.f32.mrf.mxu2  ;;  %v1484_v50 = vmul.f32 %v2442_v51, %v1446_v47  ;;  %v1350_v21 = vpop.f32.mrf.mxu3 }
 0x220   :  { %v1302_v54 = vadd.f32 %v1301_v45, %v1253_v44 }
 0x221   :  { %v1529_v1 = vadd.f32 %v1484_v50, %v1483_v49 }
 0x222   :  { %v1351_v15 = vadd.f32 %v1350_v21, %v1302_v54 }
 0x223   :  { %1530 = vadd.xlane.f32.xlu2 %v1529_v1 }
 0x224   :  { %vm1384_vm0 = vcmp.ge.f32.partialorder %v1351_v15, 0.0  ;;  %v1416_v28 = vmul.f32 0.2, %v1351_v15 }
 0x226   :  { %v1489_v58 = vpop.xlane.xlu0 %1488  ;;  %v1448_v59 = vsel %vm1384_vm0, %v1351_v15, %v1416_v28 }
 0x227   :  { %v1537_v38 = vadd.f32 %v1536_v6, %v1489_v58  ;;  %v1486_v60 = vmul.f32 %v2442_v51, %v1448_v59 }
 0x229   :  { %1554 = vst.msk [vmem:[%s2610_s7] sm:$0xff] %vm1553_vm1, %v1537_v38  ;;  %v1532_v0 = vadd.f32 %v1486_v60, %v1485_v56 }
 0x22b   :  { %1533 = vadd.xlane.f32.xlu0 %v1532_v0 }
 0x22e   :  { %v1492_v32 = vpop.xlane.xlu0 %1491 }
 0x22f   :  { %v1538_v61 = vadd.f32 %v1536_v6, %v1492_v32 }
 0x231   :  { %1555 = vst.msk [vmem:[%s2610_s7 + $0x8] sm:$0xff] %vm1553_vm1, %v1538_v61 }
 0x236   :  { %v1495_v7 = vpop.xlane.xlu1 %1494 }
 0x237   :  { %v1539_v13 = vadd.f32 %v1536_v6, %v1495_v7 }
 0x239   :  { %1556 = vst.msk [vmem:[%s2610_s7 + $0x10] sm:$0xff] %vm1553_vm1, %v1539_v13 }
 0x23e   :  { %v1498_v48 = vpop.xlane.xlu1 %1497 }
 0x23f   :  { %v1540_v51 = vadd.f32 %v1536_v6, %v1498_v48 }
 0x241   :  { %1557 = vst.msk [vmem:[%s2610_s7 + $0x18] sm:$0xff] %vm1553_vm1, %v1540_v51 }
 0x246   :  { %v1501_v40 = vpop.xlane.xlu2 %1500 }
 0x247   :  { %v1541_v57 = vadd.f32 %v1536_v6, %v1501_v40 }
 0x249   :  { %1558 = vst.msk [vmem:[%s2610_s7 + $0x20] sm:$0xff] %vm1553_vm1, %v1541_v57 }
 0x24e   :  { %v1504_v17 = vpop.xlane.xlu2 %1503 }
 0x24f   :  { %v1542_v20 = vadd.f32 %v1536_v6, %v1504_v17 }
 0x251   :  { %1559 = vst.msk [vmem:[%s2610_s7 + $0x28] sm:$0xff] %vm1553_vm1, %v1542_v20 }
 0x256   :  { %v1507_v8 = vpop.xlane.xlu0 %1506 }
 0x257   :  { %v1543_v30 = vadd.f32 %v1536_v6, %v1507_v8 }
 0x259   :  { %1560 = vst.msk [vmem:[%s2610_s7 + $0x30] sm:$0xff] %vm1553_vm1, %v1543_v30 }
 0x25e   :  { %v1510_v12 = vpop.xlane.xlu1 %1509 }
 0x25f   :  { %v1544_v4 = vadd.f32 %v1536_v6, %v1510_v12 }
 0x261   :  { %1561 = vst.msk [vmem:[%s2610_s7 + $0x38] sm:$0xff] %vm1553_vm1, %v1544_v4 }
 0x266   :  { %v1513_v35 = vpop.xlane.xlu2 %1512 }
 0x267   :  { %v1545_v39 = vadd.f32 %v1536_v6, %v1513_v35 }
 0x269   :  { %1562 = vst.msk [vmem:[%s2610_s7 + $0x40] sm:$0xff] %vm1553_vm1, %v1545_v39 }
 0x26e   :  { %v1516_v62 = vpop.xlane.xlu0 %1515 }
 0x26f   :  { %v1546_v3 = vadd.f32 %v1536_v6, %v1516_v62 }
 0x271   :  { %1563 = vst.msk [vmem:[%s2610_s7 + $0x48] sm:$0xff] %vm1553_vm1, %v1546_v3 }
 0x276   :  { %v1519_v16 = vpop.xlane.xlu1 %1518 }
 0x277   :  { %v1547_v18 = vadd.f32 %v1536_v6, %v1519_v16 }
 0x279   :  { %1564 = vst.msk [vmem:[%s2610_s7 + $0x50] sm:$0xff] %vm1553_vm1, %v1547_v18 }
 0x27e   :  { %v1522_v34 = vpop.xlane.xlu2 %1521 }
 0x27f   :  { %v1548_v52 = vadd.f32 %v1536_v6, %v1522_v34 }
 0x281   :  { %1565 = vst.msk [vmem:[%s2610_s7 + $0x58] sm:$0xff] %vm1553_vm1, %v1548_v52 }
 0x286   :  { %v1525_v23 = vpop.xlane.xlu0 %1524 }
 0x287   :  { %v1549_v31 = vadd.f32 %v1536_v6, %v1525_v23 }
 0x289   :  { %1566 = vst.msk [vmem:[%s2610_s7 + $0x60] sm:$0xff] %vm1553_vm1, %v1549_v31 }
 0x28e   :  { %v1528_v11 = vpop.xlane.xlu1 %1527 }
 0x28f   :  { %v1550_v63 = vadd.f32 %v1536_v6, %v1528_v11 }
 0x291   :  { %1567 = vst.msk [vmem:[%s2610_s7 + $0x68] sm:$0xff] %vm1553_vm1, %v1550_v63 }
 0x296   :  { %v1531_v29 = vpop.xlane.xlu2 %1530 }
 0x297   :  { %v1551_v43 = vadd.f32 %v1536_v6, %v1531_v29 }
 0x299   :  { %1568 = vst.msk [vmem:[%s2610_s7 + $0x70] sm:$0xff] %vm1553_vm1, %v1551_v43 }
 0x29e   :  { %v1534_v2 = vpop.xlane.xlu0 %1533 }
 0x29f   :  { %v1552_v24 = vadd.f32 %v1536_v6, %v1534_v2 }
 0x2a1   :  { %1569 = vst.msk [vmem:[%s2610_s7 + $0x78] sm:$0xff] %vm1553_vm1, %v1552_v24 }
 0x2a2   :  { %1574 = vsyncpa [#allocation4], 1 }

</bundles_post_ra>
